<compile_context>
chip_gen: v6e
topology: v6e:2x2x1
jax: 0.10.0
libtpu: 0.0.40
codegen_flags: <defaults>
</compile_context>

<pallas_src>
import functools
import math

import jax
import jax.numpy as jnp
from jax import lax
from jax.experimental import pallas as pl
from jax.experimental.pallas import tpu as pltpu


def mqa_kernel(x_ref, wqT_ref, bq_ref, wkT_ref, bk_ref, wvT_ref, bv_ref,
               attn_ref, out_ref, *, num_head, dim_k):
    H = num_head
    x = x_ref[0]                                                    # (S, D) bf16
    S = x.shape[0]

    # Projections: bf16 operands, f32 accumulation. Q for all heads fused into
    # one fat matmul (N = H*dim_k); shared K/V computed once per batch.
    # 1/sqrt(dim_k) is already folded into Wq/bq.
    q_all = jnp.dot(x, wqT_ref[...], preferred_element_type=jnp.float32) + bq_ref[...]  # (S, H*dk) f32
    k = jnp.dot(x, wkT_ref[...], preferred_element_type=jnp.float32) + bk_ref[...]      # (S, dk)   f32
    v = jnp.dot(x, wvT_ref[...], preferred_element_type=jnp.float32) + bv_ref[...]      # (S, dv)   f32

    k_bf = k.astype(jnp.bfloat16)
    v_bf = v.astype(jnp.bfloat16)
    dim_v = v.shape[-1]

    for h in range(H):                                              # static unrolled head loop
        q_h = q_all[:, h * dim_k:(h + 1) * dim_k].astype(jnp.bfloat16)   # (S, dk)
        # Transposed scores built directly: s_t[i_k, j_q] = K[i_k] . Q_h[j_q]
        # (already scaled). Softmax over the key axis == axis 0 here, so no
        # in-kernel transpose is ever needed.
        s_t = lax.dot_general(k_bf, q_h, (((1,), (1,)), ((), ())),
                              preferred_element_type=jnp.float32)   # (S_k, S_q) f32
        m = jnp.max(s_t, axis=0, keepdims=True)
        e = jnp.exp(s_t - m)
        denom = jnp.sum(e, axis=0, keepdims=True)
        # Exact normalization: attention probabilities are a contract output.
        attn_ref[0, h] = e / denom                                  # write-through, no concat

    # Fat PV matmul (M = H*S): read the stacked transposed-attention tiles back
    # from the output block (VMEM), cast once to bf16 for the MXU.
    a_stack = attn_ref[0].reshape(H * S, S).astype(jnp.bfloat16)    # (H*S, S_q)
    out_stack = jnp.dot(a_stack, v_bf, preferred_element_type=jnp.float32)  # (H*S, dv) f32
    out_ref[0] = out_stack.reshape(H, S, dim_v)


def _vmem_budget_cap():
    """Physical VMEM per TensorCore minus ~25% headroom for compiler scratch."""
    cap = 64 << 20  # conservative fallback = v7x's 64 MiB/TC (v5e/v6e have 128 MiB)
    try:
        cap = int(pltpu.get_tpu_info().vmem_capacity_bytes)
    except Exception:
        pass
    return (cap * 3) // 4


def multi_query_attention(x, wq, bq, wk, bk, wv, bv, *, num_head, dim_k):
    B, S, D = x.shape
    H = num_head
    dim_v = wv.shape[0]
    assert wq.shape == (H, dim_k, D)
    assert dim_k % H == 0 and dim_v % H == 0
    scale = 1.0 / math.sqrt(dim_k)

    # One-time re-layout (plain XLA, outside the grid):
    #  * pre-transpose all weights to (D, out_features) -> no in-kernel transposes,
    #  * fold 1/sqrt(dim_k) into the Q weights/biases,
    #  * store weights and activations as bf16 (MXU-native), biases stay f32.
    wqT_all = (wq.reshape(H * dim_k, D).T * scale).astype(jnp.bfloat16)   # (D, H*dk)
    bq_all = (bq.reshape(1, H * dim_k) * scale).astype(jnp.float32)
    wkT = wk.T.astype(jnp.bfloat16)                                       # (D, dk)
    bk2 = bk.reshape(1, dim_k).astype(jnp.float32)
    wvT = wv.T.astype(jnp.bfloat16)                                       # (D, dv)
    bv2 = bv.reshape(1, dim_v).astype(jnp.float32)
    x_bf = x.astype(jnp.bfloat16)

    kernel = functools.partial(mqa_kernel, num_head=H, dim_k=dim_k)

    # VMEM budget from the actual per-step tile footprint, capped by the
    # generation-aware headroom cap (never the full physical VMEM).
    bf16_b, f32_b = 2, 4
    x_tile = S * D * bf16_b
    weight_bytes = D * (H * dim_k + dim_k + dim_v) * bf16_b
    bias_bytes = (H * dim_k + dim_k + dim_v) * f32_b
    out_tile = (H * S * S + H * S * dim_v) * f32_b
    interm = (S * (H * dim_k + dim_k + dim_v) + 6 * H * S * S + 2 * H * S * dim_v) * f32_b
    vmem_request = int(1.5 * (2 * (x_tile + out_tile) + 2 * (weight_bytes + bias_bytes) + interm))
    vmem_limit = min(max(8 << 20, vmem_request), _vmem_budget_cap())

    def _wspec(shape, single_buffer):
        # All grid-invariant operands here are rank-2; constant index_map means
        # they are fetched once, so single-buffer them when supported.
        if single_buffer:
            return pl.BlockSpec(shape, lambda b: (0, 0), pipeline_mode=pl.Buffered(1))
        return pl.BlockSpec(shape, lambda b: (0, 0))

    def _call(single_buffer_weights):
        grid_spec = pltpu.PrefetchScalarGridSpec(
            num_scalar_prefetch=0,
            grid=(B,),
            in_specs=[
                pl.BlockSpec((1, S, D), lambda b: (b, 0, 0)),                 # x (bf16)
                _wspec((D, H * dim_k), single_buffer_weights),                # Wq^T (all heads, scaled)
                _wspec((1, H * dim_k), single_buffer_weights),                # bq (scaled)
                _wspec((D, dim_k), single_buffer_weights),                    # Wk^T (shared)
                _wspec((1, dim_k), single_buffer_weights),                    # bk
                _wspec((D, dim_v), single_buffer_weights),                    # Wv^T (shared)
                _wspec((1, dim_v), single_buffer_weights),                    # bv
            ],
            out_specs=[
                pl.BlockSpec((1, H, S, S), lambda b: (b, 0, 0, 0)),           # attention^T
                pl.BlockSpec((1, H, S, dim_v), lambda b: (b, 0, 0, 0)),       # attention^T @ V
            ],
        )
        return pl.pallas_call(
            kernel,
            out_shape=(
                jax.ShapeDtypeStruct((B, H, S, S), jnp.float32),
                jax.ShapeDtypeStruct((B, H, S, dim_v), jnp.float32),
            ),
            grid_spec=grid_spec,
            compiler_params=pltpu.CompilerParams(
                dimension_semantics=("parallel",),
                vmem_limit_bytes=vmem_limit,
            ),
        )(x_bf, wqT_all, bq_all, wkT, bk2, wvT, bv2)

    try:
        attn, out = _call(True)
    except Exception:
        # pipeline_mode=pl.Buffered(1) not supported by this JAX build; fall
        # back to default double-buffering of the (tiny) grid-invariant weights.
        attn, out = _call(False)

    # torch: output.reshape(-1, x.shape[1], x.shape[2]) -- requires dim_v == D.
    assert dim_v == D, "torch reference reshape requires dim_v == input_dim"
    output = out.reshape(-1, S, dim_v)
    return attn, output


def reference(x, wq, bq, wk, bk, wv, bv, *, num_head, dim_k):
    """Pure-JAX f32 mirror of the PyTorch forward."""
    B, S, D = x.shape
    H = num_head
    Q = jnp.einsum('bsd,hkd->bhsk', x, wq) + bq[None, :, None, :]   # (B,H,S,dk)
    K = x @ wk.T + bk                                               # (B,S,dk)
    V = x @ wv.T + bv                                               # (B,S,dv)
    scores = jnp.einsum('bhqk,bsk->bhqs', Q, K) / math.sqrt(dim_k)
    attn = jax.nn.softmax(scores, axis=-1)
    attn_t = jnp.swapaxes(attn, -1, -2)
    out = jnp.einsum('bhij,bjv->bhiv', attn_t, V)
    return attn_t, out.reshape(-1, S, V.shape[-1])


if __name__ == "__main__":
    B, S, D = 2, 8, 32            # batch, seq, input_dim
    H, dim_k, dim_v = 4, 32, 32   # dim_v == input_dim so the torch reshape is valid

    key = jax.random.PRNGKey(0)
    ks = jax.random.split(key, 7)
    bound = 1.0 / math.sqrt(D)
    wq = jax.random.uniform(ks[0], (H, dim_k, D), jnp.float32, -bound, bound)
    bq = jax.random.uniform(ks[1], (H, dim_k), jnp.float32, -bound, bound)
    wk = jax.random.uniform(ks[2], (dim_k, D), jnp.float32, -bound, bound)
    bk = jax.random.uniform(ks[3], (dim_k,), jnp.float32, -bound, bound)
    wv = jax.random.uniform(ks[4], (dim_v, D), jnp.float32, -bound, bound)
    bv = jax.random.uniform(ks[5], (dim_v,), jnp.float32, -bound, bound)
    x = jax.random.normal(ks[6], (B, S, D), jnp.float32)

    attn, out = multi_query_attention(x, wq, bq, wk, bk, wv, bv,
                                      num_head=H, dim_k=dim_k)
    jax.block_until_ready((attn, out))

    attn_ref, out_ref = reference(x, wq, bq, wk, bk, wv, bv,
                                  num_head=H, dim_k=dim_k)
    assert attn.shape == (B, H, S, S)
    assert out.shape == (B * H, S, D)
    # Softmax normalization is exact now; the residual error (vs the f32
    # reference) comes only from the bf16 MXU operands, well under 1e-2 here.
    assert jnp.allclose(attn, attn_ref, atol=1e-2, rtol=1e-2)
    assert jnp.allclose(out, out_ref, atol=1e-2, rtol=1e-2)

    print("KERNEL_OK")
</pallas_src>

<mosaic_0001>
module attributes {stable_mosaic.version = 11 : i64} {
  func.func @mqa_kernel(%arg0: i32, %arg1: memref<1x8x32xbf16, #tpu.memory_space<vmem>>, %arg2: memref<32x128xbf16, #tpu.memory_space<vmem>>, %arg3: memref<1x128xf32, #tpu.memory_space<vmem>>, %arg4: memref<32x32xbf16, #tpu.memory_space<vmem>>, %arg5: memref<1x32xf32, #tpu.memory_space<vmem>>, %arg6: memref<32x32xbf16, #tpu.memory_space<vmem>>, %arg7: memref<1x32xf32, #tpu.memory_space<vmem>>, %arg8: memref<1x4x8x8xf32, #tpu.memory_space<vmem>>, %arg9: memref<1x4x8x32xf32, #tpu.memory_space<vmem>>) attributes {dimension_semantics = [#tpu.dimension_semantics<parallel>], iteration_bounds = array<i64: 2>, scalar_prefetch = 0 : i64, scratch_operands = 0 : i64, tpu.core_type = #tpu.core_type<tc>, window_params = [{transform_indices = @transform_0, window_bounds = array<i64: 1, 8, 32>}, {pipeline_mode = #tpu.pipeline_mode<synchronous>, transform_indices = @transform_1, window_bounds = array<i64: 32, 128>}, {pipeline_mode = #tpu.pipeline_mode<synchronous>, transform_indices = @transform_2, window_bounds = array<i64: 1, 128>}, {pipeline_mode = #tpu.pipeline_mode<synchronous>, transform_indices = @transform_3, window_bounds = array<i64: 32, 32>}, {pipeline_mode = #tpu.pipeline_mode<synchronous>, transform_indices = @transform_4, window_bounds = array<i64: 1, 32>}, {pipeline_mode = #tpu.pipeline_mode<synchronous>, transform_indices = @transform_5, window_bounds = array<i64: 32, 32>}, {pipeline_mode = #tpu.pipeline_mode<synchronous>, transform_indices = @transform_6, window_bounds = array<i64: 1, 32>}, {transform_indices = @transform_7, window_bounds = array<i64: 1, 4, 8, 8>}, {transform_indices = @transform_8, window_bounds = array<i64: 1, 4, 8, 32>}]} {
    %c0 = arith.constant 0 : index
    %c0_0 = arith.constant 0 : index
    %c0_1 = arith.constant 0 : index
    %0 = vector.load %arg1[%c0, %c0_0, %c0_1] : memref<1x8x32xbf16, #tpu.memory_space<vmem>>, vector<1x8x32xbf16>
    %1 = vector.shape_cast %0 : vector<1x8x32xbf16> to vector<8x32xbf16>
    %c0_2 = arith.constant 0 : index
    %c0_3 = arith.constant 0 : index
    %2 = vector.load %arg2[%c0_2, %c0_3] : memref<32x128xbf16, #tpu.memory_space<vmem>>, vector<32x128xbf16>
    %cst = arith.constant dense<0.000000e+00> : vector<8x128xf32>
    %3 = tpu.matmul %1, %2, %cst {dimension_numbers = #tpu.dot_dimension_numbers<[1], [0], [0], [1], [0, 0, 1, 1], [], []>} : vector<8x32xbf16>, vector<32x128xbf16>, vector<8x128xf32> -> vector<8x128xf32>
    %c0_4 = arith.constant 0 : index
    %c0_5 = arith.constant 0 : index
    %4 = vector.load %arg3[%c0_4, %c0_5] : memref<1x128xf32, #tpu.memory_space<vmem>>, vector<1x128xf32>
    %5 = vector.broadcast %4 : vector<1x128xf32> to vector<8x128xf32>
    %6 = arith.addf %3, %5 : vector<8x128xf32>
    %c0_6 = arith.constant 0 : index
    %c0_7 = arith.constant 0 : index
    %7 = vector.load %arg4[%c0_6, %c0_7] : memref<32x32xbf16, #tpu.memory_space<vmem>>, vector<32x32xbf16>
    %cst_8 = arith.constant dense<0.000000e+00> : vector<8x32xf32>
    %8 = tpu.matmul %1, %7, %cst_8 {dimension_numbers = #tpu.dot_dimension_numbers<[1], [0], [0], [1], [0, 0, 1, 1], [], []>} : vector<8x32xbf16>, vector<32x32xbf16>, vector<8x32xf32> -> vector<8x32xf32>
    %c0_9 = arith.constant 0 : index
    %c0_10 = arith.constant 0 : index
    %9 = vector.load %arg5[%c0_9, %c0_10] : memref<1x32xf32, #tpu.memory_space<vmem>>, vector<1x32xf32>
    %10 = vector.broadcast %9 : vector<1x32xf32> to vector<8x32xf32>
    %11 = arith.addf %8, %10 : vector<8x32xf32>
    %c0_11 = arith.constant 0 : index
    %c0_12 = arith.constant 0 : index
    %12 = vector.load %arg6[%c0_11, %c0_12] : memref<32x32xbf16, #tpu.memory_space<vmem>>, vector<32x32xbf16>
    %cst_13 = arith.constant dense<0.000000e+00> : vector<8x32xf32>
    %13 = tpu.matmul %1, %12, %cst_13 {dimension_numbers = #tpu.dot_dimension_numbers<[1], [0], [0], [1], [0, 0, 1, 1], [], []>} : vector<8x32xbf16>, vector<32x32xbf16>, vector<8x32xf32> -> vector<8x32xf32>
    %c0_14 = arith.constant 0 : index
    %c0_15 = arith.constant 0 : index
    %14 = vector.load %arg7[%c0_14, %c0_15] : memref<1x32xf32, #tpu.memory_space<vmem>>, vector<1x32xf32>
    %15 = vector.broadcast %14 : vector<1x32xf32> to vector<8x32xf32>
    %16 = arith.addf %13, %15 : vector<8x32xf32>
    %17 = arith.truncf %11 : vector<8x32xf32> to vector<8x32xbf16>
    %18 = arith.truncf %16 : vector<8x32xf32> to vector<8x32xbf16>
    %19 = vector.extract_strided_slice %6 {offsets = [0, 0], sizes = [8, 32], strides = [1, 1]} : vector<8x128xf32> to vector<8x32xf32>
    %20 = arith.truncf %19 : vector<8x32xf32> to vector<8x32xbf16>
    %cst_16 = arith.constant dense<0.000000e+00> : vector<8x8xf32>
    %21 = tpu.matmul %17, %20, %cst_16 {dimension_numbers = #tpu.dot_dimension_numbers<[1], [1], [0], [0], [0, 0, 1, 0], [], []>} : vector<8x32xbf16>, vector<8x32xbf16>, vector<8x8xf32> -> vector<8x8xf32>
    %cst_17 = arith.constant dense<0xFF800000> : vector<8xf32>
    %22 = vector.multi_reduction <maximumf>, %21, %cst_17 [0] : vector<8x8xf32> to vector<8xf32>
    %23 = vector.shape_cast %22 : vector<8xf32> to vector<1x8xf32>
    %24 = vector.broadcast %23 : vector<1x8xf32> to vector<8x8xf32>
    %25 = arith.subf %21, %24 : vector<8x8xf32>
    %26 = math.exp %25 : vector<8x8xf32>
    %cst_18 = arith.constant dense<0.000000e+00> : vector<8xf32>
    %27 = vector.multi_reduction <add>, %26, %cst_18 [0] : vector<8x8xf32> to vector<8xf32>
    %28 = vector.shape_cast %27 : vector<8xf32> to vector<1x8xf32>
    %29 = vector.broadcast %28 : vector<1x8xf32> to vector<8x8xf32>
    %30 = arith.divf %26, %29 : vector<8x8xf32>
    %c0_19 = arith.constant 0 : index
    %c0_20 = arith.constant 0 : index
    %c0_21 = arith.constant 0 : index
    %c0_22 = arith.constant 0 : index
    %31 = vector.load %arg8[%c0_19, %c0_20, %c0_21, %c0_22] : memref<1x4x8x8xf32, #tpu.memory_space<vmem>>, vector<1x1x8x8xf32>
    %32 = vector.shape_cast %31 : vector<1x1x8x8xf32> to vector<8x8xf32>
    %33 = vector.shape_cast %30 : vector<8x8xf32> to vector<1x1x8x8xf32>
    tpu.vector_store %arg8[%c0_19, %c0_20, %c0_21, %c0_22], %33 {strides = array<i32>} : memref<1x4x8x8xf32, #tpu.memory_space<vmem>>, vector<1x1x8x8xf32>,
    %34 = vector.extract_strided_slice %6 {offsets = [0, 32], sizes = [8, 32], strides = [1, 1]} : vector<8x128xf32> to vector<8x32xf32>
    %35 = arith.truncf %34 : vector<8x32xf32> to vector<8x32xbf16>
    %cst_23 = arith.constant dense<0.000000e+00> : vector<8x8xf32>
    %36 = tpu.matmul %17, %35, %cst_23 {dimension_numbers = #tpu.dot_dimension_numbers<[1], [1], [0], [0], [0, 0, 1, 0], [], []>} : vector<8x32xbf16>, vector<8x32xbf16>, vector<8x8xf32> -> vector<8x8xf32>
    %cst_24 = arith.constant dense<0xFF800000> : vector<8xf32>
    %37 = vector.multi_reduction <maximumf>, %36, %cst_24 [0] : vector<8x8xf32> to vector<8xf32>
    %38 = vector.shape_cast %37 : vector<8xf32> to vector<1x8xf32>
    %39 = vector.broadcast %38 : vector<1x8xf32> to vector<8x8xf32>
    %40 = arith.subf %36, %39 : vector<8x8xf32>
    %41 = math.exp %40 : vector<8x8xf32>
    %cst_25 = arith.constant dense<0.000000e+00> : vector<8xf32>
    %42 = vector.multi_reduction <add>, %41, %cst_25 [0] : vector<8x8xf32> to vector<8xf32>
    %43 = vector.shape_cast %42 : vector<8xf32> to vector<1x8xf32>
    %44 = vector.broadcast %43 : vector<1x8xf32> to vector<8x8xf32>
    %45 = arith.divf %41, %44 : vector<8x8xf32>
    %c0_26 = arith.constant 0 : index
    %c1 = arith.constant 1 : index
    %c0_27 = arith.constant 0 : index
    %c0_28 = arith.constant 0 : index
    %46 = vector.load %arg8[%c0_26, %c1, %c0_27, %c0_28] : memref<1x4x8x8xf32, #tpu.memory_space<vmem>>, vector<1x1x8x8xf32>
    %47 = vector.shape_cast %46 : vector<1x1x8x8xf32> to vector<8x8xf32>
    %48 = vector.shape_cast %45 : vector<8x8xf32> to vector<1x1x8x8xf32>
    tpu.vector_store %arg8[%c0_26, %c1, %c0_27, %c0_28], %48 {strides = array<i32>} : memref<1x4x8x8xf32, #tpu.memory_space<vmem>>, vector<1x1x8x8xf32>,
    %49 = vector.extract_strided_slice %6 {offsets = [0, 64], sizes = [8, 32], strides = [1, 1]} : vector<8x128xf32> to vector<8x32xf32>
    %50 = arith.truncf %49 : vector<8x32xf32> to vector<8x32xbf16>
    %cst_29 = arith.constant dense<0.000000e+00> : vector<8x8xf32>
    %51 = tpu.matmul %17, %50, %cst_29 {dimension_numbers = #tpu.dot_dimension_numbers<[1], [1], [0], [0], [0, 0, 1, 0], [], []>} : vector<8x32xbf16>, vector<8x32xbf16>, vector<8x8xf32> -> vector<8x8xf32>
    %cst_30 = arith.constant dense<0xFF800000> : vector<8xf32>
    %52 = vector.multi_reduction <maximumf>, %51, %cst_30 [0] : vector<8x8xf32> to vector<8xf32>
    %53 = vector.shape_cast %52 : vector<8xf32> to vector<1x8xf32>
    %54 = vector.broadcast %53 : vector<1x8xf32> to vector<8x8xf32>
    %55 = arith.subf %51, %54 : vector<8x8xf32>
    %56 = math.exp %55 : vector<8x8xf32>
    %cst_31 = arith.constant dense<0.000000e+00> : vector<8xf32>
    %57 = vector.multi_reduction <add>, %56, %cst_31 [0] : vector<8x8xf32> to vector<8xf32>
    %58 = vector.shape_cast %57 : vector<8xf32> to vector<1x8xf32>
    %59 = vector.broadcast %58 : vector<1x8xf32> to vector<8x8xf32>
    %60 = arith.divf %56, %59 : vector<8x8xf32>
    %c0_32 = arith.constant 0 : index
    %c2 = arith.constant 2 : index
    %c0_33 = arith.constant 0 : index
    %c0_34 = arith.constant 0 : index
    %61 = vector.load %arg8[%c0_32, %c2, %c0_33, %c0_34] : memref<1x4x8x8xf32, #tpu.memory_space<vmem>>, vector<1x1x8x8xf32>
    %62 = vector.shape_cast %61 : vector<1x1x8x8xf32> to vector<8x8xf32>
    %63 = vector.shape_cast %60 : vector<8x8xf32> to vector<1x1x8x8xf32>
    tpu.vector_store %arg8[%c0_32, %c2, %c0_33, %c0_34], %63 {strides = array<i32>} : memref<1x4x8x8xf32, #tpu.memory_space<vmem>>, vector<1x1x8x8xf32>,
    %64 = vector.extract_strided_slice %6 {offsets = [0, 96], sizes = [8, 32], strides = [1, 1]} : vector<8x128xf32> to vector<8x32xf32>
    %65 = arith.truncf %64 : vector<8x32xf32> to vector<8x32xbf16>
    %cst_35 = arith.constant dense<0.000000e+00> : vector<8x8xf32>
    %66 = tpu.matmul %17, %65, %cst_35 {dimension_numbers = #tpu.dot_dimension_numbers<[1], [1], [0], [0], [0, 0, 1, 0], [], []>} : vector<8x32xbf16>, vector<8x32xbf16>, vector<8x8xf32> -> vector<8x8xf32>
    %cst_36 = arith.constant dense<0xFF800000> : vector<8xf32>
    %67 = vector.multi_reduction <maximumf>, %66, %cst_36 [0] : vector<8x8xf32> to vector<8xf32>
    %68 = vector.shape_cast %67 : vector<8xf32> to vector<1x8xf32>
    %69 = vector.broadcast %68 : vector<1x8xf32> to vector<8x8xf32>
    %70 = arith.subf %66, %69 : vector<8x8xf32>
    %71 = math.exp %70 : vector<8x8xf32>
    %cst_37 = arith.constant dense<0.000000e+00> : vector<8xf32>
    %72 = vector.multi_reduction <add>, %71, %cst_37 [0] : vector<8x8xf32> to vector<8xf32>
    %73 = vector.shape_cast %72 : vector<8xf32> to vector<1x8xf32>
    %74 = vector.broadcast %73 : vector<1x8xf32> to vector<8x8xf32>
    %75 = arith.divf %71, %74 : vector<8x8xf32>
    %c0_38 = arith.constant 0 : index
    %c3 = arith.constant 3 : index
    %c0_39 = arith.constant 0 : index
    %c0_40 = arith.constant 0 : index
    %76 = vector.load %arg8[%c0_38, %c3, %c0_39, %c0_40] : memref<1x4x8x8xf32, #tpu.memory_space<vmem>>, vector<1x1x8x8xf32>
    %77 = vector.shape_cast %76 : vector<1x1x8x8xf32> to vector<8x8xf32>
    %78 = vector.shape_cast %75 : vector<8x8xf32> to vector<1x1x8x8xf32>
    tpu.vector_store %arg8[%c0_38, %c3, %c0_39, %c0_40], %78 {strides = array<i32>} : memref<1x4x8x8xf32, #tpu.memory_space<vmem>>, vector<1x1x8x8xf32>,
    %c0_41 = arith.constant 0 : index
    %c0_42 = arith.constant 0 : index
    %c0_43 = arith.constant 0 : index
    %c0_44 = arith.constant 0 : index
    %79 = vector.load %arg8[%c0_41, %c0_42, %c0_43, %c0_44] : memref<1x4x8x8xf32, #tpu.memory_space<vmem>>, vector<1x4x8x8xf32>
    %80 = vector.shape_cast %79 : vector<1x4x8x8xf32> to vector<4x8x8xf32>
    %81 = vector.shape_cast %80 : vector<4x8x8xf32> to vector<32x8xf32>
    %82 = arith.truncf %81 : vector<32x8xf32> to vector<32x8xbf16>
    %cst_45 = arith.constant dense<0.000000e+00> : vector<32x32xf32>
    %83 = tpu.matmul %82, %18, %cst_45 {dimension_numbers = #tpu.dot_dimension_numbers<[1], [0], [0], [1], [0, 0, 1, 1], [], []>} : vector<32x8xbf16>, vector<8x32xbf16>, vector<32x32xf32> -> vector<32x32xf32>
    %84 = vector.shape_cast %83 : vector<32x32xf32> to vector<4x8x32xf32>
    %c0_46 = arith.constant 0 : index
    %c0_47 = arith.constant 0 : index
    %c0_48 = arith.constant 0 : index
    %c0_49 = arith.constant 0 : index
    %85 = vector.load %arg9[%c0_46, %c0_47, %c0_48, %c0_49] : memref<1x4x8x32xf32, #tpu.memory_space<vmem>>, vector<1x4x8x32xf32>
    %86 = vector.shape_cast %85 : vector<1x4x8x32xf32> to vector<4x8x32xf32>
    %87 = vector.shape_cast %84 : vector<4x8x32xf32> to vector<1x4x8x32xf32>
    tpu.vector_store %arg9[%c0_46, %c0_47, %c0_48, %c0_49], %87 {strides = array<i32>} : memref<1x4x8x32xf32, #tpu.memory_space<vmem>>, vector<1x4x8x32xf32>,
    return
  }
  func.func @transform_0(%arg0: i32) -> (i32, i32, i32) {
    %c0_i32 = arith.constant 0 : i32
    %c0_i32_0 = arith.constant 0 : i32
    %c0_i32_1 = arith.constant 0 : i32
    return %arg0, %c0_i32, %c0_i32_0 : i32, i32, i32
  }
  func.func @transform_1(%arg0: i32) -> (i32, i32) {
    %c0_i32 = arith.constant 0 : i32
    %c0_i32_0 = arith.constant 0 : i32
    %c0_i32_1 = arith.constant 0 : i32
    return %c0_i32, %c0_i32_0 : i32, i32
  }
  func.func @transform_2(%arg0: i32) -> (i32, i32) {
    %c0_i32 = arith.constant 0 : i32
    %c0_i32_0 = arith.constant 0 : i32
    %c0_i32_1 = arith.constant 0 : i32
    return %c0_i32, %c0_i32_0 : i32, i32
  }
  func.func @transform_3(%arg0: i32) -> (i32, i32) {
    %c0_i32 = arith.constant 0 : i32
    %c0_i32_0 = arith.constant 0 : i32
    %c0_i32_1 = arith.constant 0 : i32
    return %c0_i32, %c0_i32_0 : i32, i32
  }
  func.func @transform_4(%arg0: i32) -> (i32, i32) {
    %c0_i32 = arith.constant 0 : i32
    %c0_i32_0 = arith.constant 0 : i32
    %c0_i32_1 = arith.constant 0 : i32
    return %c0_i32, %c0_i32_0 : i32, i32
  }
  func.func @transform_5(%arg0: i32) -> (i32, i32) {
    %c0_i32 = arith.constant 0 : i32
    %c0_i32_0 = arith.constant 0 : i32
    %c0_i32_1 = arith.constant 0 : i32
    return %c0_i32, %c0_i32_0 : i32, i32
  }
  func.func @transform_6(%arg0: i32) -> (i32, i32) {
    %c0_i32 = arith.constant 0 : i32
    %c0_i32_0 = arith.constant 0 : i32
    %c0_i32_1 = arith.constant 0 : i32
    return %c0_i32, %c0_i32_0 : i32, i32
  }
  func.func @transform_7(%arg0: i32) -> (i32, i32, i32, i32) {
    %c0_i32 = arith.constant 0 : i32
    %c0_i32_0 = arith.constant 0 : i32
    %c0_i32_1 = arith.constant 0 : i32
    %c0_i32_2 = arith.constant 0 : i32
    return %arg0, %c0_i32, %c0_i32_0, %c0_i32_1 : i32, i32, i32, i32
  }
  func.func @transform_8(%arg0: i32) -> (i32, i32, i32, i32) {
    %c0_i32 = arith.constant 0 : i32
    %c0_i32_0 = arith.constant 0 : i32
    %c0_i32_1 = arith.constant 0 : i32
    %c0_i32_2 = arith.constant 0 : i32
    return %arg0, %c0_i32, %c0_i32_0, %c0_i32_1 : i32, i32, i32, i32
  }
}

module attributes {stable_mosaic.version = 11 : i64} {
  func.func @mqa_kernel(%arg0: i32, %arg1: memref<1x8x32xbf16, #tpu.memory_space<vmem>>, %arg2: memref<32x128xbf16, #tpu.memory_space<vmem>>, %arg3: memref<1x128xf32, #tpu.memory_space<vmem>>, %arg4: memref<32x32xbf16, #tpu.memory_space<vmem>>, %arg5: memref<1x32xf32, #tpu.memory_space<vmem>>, %arg6: memref<32x32xbf16, #tpu.memory_space<vmem>>, %arg7: memref<1x32xf32, #tpu.memory_space<vmem>>, %arg8: memref<1x4x8x8xf32, #tpu.memory_space<vmem>>, %arg9: memref<1x4x8x32xf32, #tpu.memory_space<vmem>>) attributes {dimension_semantics = [#tpu.dimension_semantics<parallel>], iteration_bounds = array<i64: 2>, scalar_prefetch = 0 : i64, scratch_operands = 0 : i64, tpu.core_type = #tpu.core_type<tc>, window_params = [{transform_indices = @transform_0, window_bounds = array<i64: 1, 8, 32>}, {pipeline_mode = #tpu.pipeline_mode<synchronous>, transform_indices = @transform_1, window_bounds = array<i64: 32, 128>}, {pipeline_mode = #tpu.pipeline_mode<synchronous>, transform_indices = @transform_2, window_bounds = array<i64: 1, 128>}, {pipeline_mode = #tpu.pipeline_mode<synchronous>, transform_indices = @transform_3, window_bounds = array<i64: 32, 32>}, {pipeline_mode = #tpu.pipeline_mode<synchronous>, transform_indices = @transform_4, window_bounds = array<i64: 1, 32>}, {pipeline_mode = #tpu.pipeline_mode<synchronous>, transform_indices = @transform_5, window_bounds = array<i64: 32, 32>}, {pipeline_mode = #tpu.pipeline_mode<synchronous>, transform_indices = @transform_6, window_bounds = array<i64: 1, 32>}, {transform_indices = @transform_7, window_bounds = array<i64: 1, 4, 8, 8>}, {transform_indices = @transform_8, window_bounds = array<i64: 1, 4, 8, 32>}]} {
    %c0 = arith.constant 0 : index
    %c0_0 = arith.constant 0 : index
    %c0_1 = arith.constant 0 : index
    %0 = vector.load %arg1[%c0, %c0_0, %c0_1] : memref<1x8x32xbf16, #tpu.memory_space<vmem>>, vector<1x8x32xbf16>
    %1 = vector.shape_cast %0 : vector<1x8x32xbf16> to vector<8x32xbf16>
    %c0_2 = arith.constant 0 : index
    %c0_3 = arith.constant 0 : index
    %2 = vector.load %arg2[%c0_2, %c0_3] : memref<32x128xbf16, #tpu.memory_space<vmem>>, vector<32x128xbf16>
    %cst = arith.constant dense<0.000000e+00> : vector<8x128xf32>
    %3 = tpu.matmul %1, %2, %cst {dimension_numbers = #tpu.dot_dimension_numbers<[1], [0], [0], [1], [0, 0, 1, 1], [], []>} : vector<8x32xbf16>, vector<32x128xbf16>, vector<8x128xf32> -> vector<8x128xf32>
    %c0_4 = arith.constant 0 : index
    %c0_5 = arith.constant 0 : index
    %4 = vector.load %arg3[%c0_4, %c0_5] : memref<1x128xf32, #tpu.memory_space<vmem>>, vector<1x128xf32>
    %5 = vector.broadcast %4 : vector<1x128xf32> to vector<8x128xf32>
    %6 = arith.addf %3, %5 : vector<8x128xf32>
    %c0_6 = arith.constant 0 : index
    %c0_7 = arith.constant 0 : index
    %7 = vector.load %arg4[%c0_6, %c0_7] : memref<32x32xbf16, #tpu.memory_space<vmem>>, vector<32x32xbf16>
    %cst_8 = arith.constant dense<0.000000e+00> : vector<8x32xf32>
    %8 = tpu.matmul %1, %7, %cst_8 {dimension_numbers = #tpu.dot_dimension_numbers<[1], [0], [0], [1], [0, 0, 1, 1], [], []>} : vector<8x32xbf16>, vector<32x32xbf16>, vector<8x32xf32> -> vector<8x32xf32>
    %c0_9 = arith.constant 0 : index
    %c0_10 = arith.constant 0 : index
    %9 = vector.load %arg5[%c0_9, %c0_10] : memref<1x32xf32, #tpu.memory_space<vmem>>, vector<1x32xf32>
    %10 = vector.broadcast %9 : vector<1x32xf32> to vector<8x32xf32>
    %11 = arith.addf %8, %10 : vector<8x32xf32>
    %c0_11 = arith.constant 0 : index
    %c0_12 = arith.constant 0 : index
    %12 = vector.load %arg6[%c0_11, %c0_12] : memref<32x32xbf16, #tpu.memory_space<vmem>>, vector<32x32xbf16>
    %cst_13 = arith.constant dense<0.000000e+00> : vector<8x32xf32>
    %13 = tpu.matmul %1, %12, %cst_13 {dimension_numbers = #tpu.dot_dimension_numbers<[1], [0], [0], [1], [0, 0, 1, 1], [], []>} : vector<8x32xbf16>, vector<32x32xbf16>, vector<8x32xf32> -> vector<8x32xf32>
    %c0_14 = arith.constant 0 : index
    %c0_15 = arith.constant 0 : index
    %14 = vector.load %arg7[%c0_14, %c0_15] : memref<1x32xf32, #tpu.memory_space<vmem>>, vector<1x32xf32>
    %15 = vector.broadcast %14 : vector<1x32xf32> to vector<8x32xf32>
    %16 = arith.addf %13, %15 : vector<8x32xf32>
    %17 = arith.truncf %11 : vector<8x32xf32> to vector<8x32xbf16>
    %18 = arith.truncf %16 : vector<8x32xf32> to vector<8x32xbf16>
    %19 = vector.extract_strided_slice %6 {offsets = [0, 0], sizes = [8, 32], strides = [1, 1]} : vector<8x128xf32> to vector<8x32xf32>
    %20 = arith.truncf %19 : vector<8x32xf32> to vector<8x32xbf16>
    %cst_16 = arith.constant dense<0.000000e+00> : vector<8x8xf32>
    %21 = tpu.matmul %17, %20, %cst_16 {dimension_numbers = #tpu.dot_dimension_numbers<[1], [1], [0], [0], [0, 0, 1, 0], [], []>} : vector<8x32xbf16>, vector<8x32xbf16>, vector<8x8xf32> -> vector<8x8xf32>
    %cst_17 = arith.constant dense<0xFF800000> : vector<8xf32>
    %22 = vector.multi_reduction <maximumf>, %21, %cst_17 [0] : vector<8x8xf32> to vector<8xf32>
    %23 = vector.shape_cast %22 : vector<8xf32> to vector<1x8xf32>
    %24 = vector.broadcast %23 : vector<1x8xf32> to vector<8x8xf32>
    %25 = arith.subf %21, %24 : vector<8x8xf32>
    %26 = math.exp %25 : vector<8x8xf32>
    %cst_18 = arith.constant dense<0.000000e+00> : vector<8xf32>
    %27 = vector.multi_reduction <add>, %26, %cst_18 [0] : vector<8x8xf32> to vector<8xf32>
    %28 = vector.shape_cast %27 : vector<8xf32> to vector<1x8xf32>
    %29 = vector.broadcast %28 : vector<1x8xf32> to vector<8x8xf32>
    %30 = arith.divf %26, %29 : vector<8x8xf32>
    %c0_19 = arith.constant 0 : index
    %c0_20 = arith.constant 0 : index
    %c0_21 = arith.constant 0 : index
    %c0_22 = arith.constant 0 : index
    %31 = vector.load %arg8[%c0_19, %c0_20, %c0_21, %c0_22] : memref<1x4x8x8xf32, #tpu.memory_space<vmem>>, vector<1x1x8x8xf32>
    %32 = vector.shape_cast %31 : vector<1x1x8x8xf32> to vector<8x8xf32>
    %33 = vector.shape_cast %30 : vector<8x8xf32> to vector<1x1x8x8xf32>
    tpu.vector_store %arg8[%c0_19, %c0_20, %c0_21, %c0_22], %33 {strides = array<i32>} : memref<1x4x8x8xf32, #tpu.memory_space<vmem>>, vector<1x1x8x8xf32>,
    %34 = vector.extract_strided_slice %6 {offsets = [0, 32], sizes = [8, 32], strides = [1, 1]} : vector<8x128xf32> to vector<8x32xf32>
    %35 = arith.truncf %34 : vector<8x32xf32> to vector<8x32xbf16>
    %cst_23 = arith.constant dense<0.000000e+00> : vector<8x8xf32>
    %36 = tpu.matmul %17, %35, %cst_23 {dimension_numbers = #tpu.dot_dimension_numbers<[1], [1], [0], [0], [0, 0, 1, 0], [], []>} : vector<8x32xbf16>, vector<8x32xbf16>, vector<8x8xf32> -> vector<8x8xf32>
    %cst_24 = arith.constant dense<0xFF800000> : vector<8xf32>
    %37 = vector.multi_reduction <maximumf>, %36, %cst_24 [0] : vector<8x8xf32> to vector<8xf32>
    %38 = vector.shape_cast %37 : vector<8xf32> to vector<1x8xf32>
    %39 = vector.broadcast %38 : vector<1x8xf32> to vector<8x8xf32>
    %40 = arith.subf %36, %39 : vector<8x8xf32>
    %41 = math.exp %40 : vector<8x8xf32>
    %cst_25 = arith.constant dense<0.000000e+00> : vector<8xf32>
    %42 = vector.multi_reduction <add>, %41, %cst_25 [0] : vector<8x8xf32> to vector<8xf32>
    %43 = vector.shape_cast %42 : vector<8xf32> to vector<1x8xf32>
    %44 = vector.broadcast %43 : vector<1x8xf32> to vector<8x8xf32>
    %45 = arith.divf %41, %44 : vector<8x8xf32>
    %c0_26 = arith.constant 0 : index
    %c1 = arith.constant 1 : index
    %c0_27 = arith.constant 0 : index
    %c0_28 = arith.constant 0 : index
    %46 = vector.load %arg8[%c0_26, %c1, %c0_27, %c0_28] : memref<1x4x8x8xf32, #tpu.memory_space<vmem>>, vector<1x1x8x8xf32>
    %47 = vector.shape_cast %46 : vector<1x1x8x8xf32> to vector<8x8xf32>
    %48 = vector.shape_cast %45 : vector<8x8xf32> to vector<1x1x8x8xf32>
    tpu.vector_store %arg8[%c0_26, %c1, %c0_27, %c0_28], %48 {strides = array<i32>} : memref<1x4x8x8xf32, #tpu.memory_space<vmem>>, vector<1x1x8x8xf32>,
    %49 = vector.extract_strided_slice %6 {offsets = [0, 64], sizes = [8, 32], strides = [1, 1]} : vector<8x128xf32> to vector<8x32xf32>
    %50 = arith.truncf %49 : vector<8x32xf32> to vector<8x32xbf16>
    %cst_29 = arith.constant dense<0.000000e+00> : vector<8x8xf32>
    %51 = tpu.matmul %17, %50, %cst_29 {dimension_numbers = #tpu.dot_dimension_numbers<[1], [1], [0], [0], [0, 0, 1, 0], [], []>} : vector<8x32xbf16>, vector<8x32xbf16>, vector<8x8xf32> -> vector<8x8xf32>
    %cst_30 = arith.constant dense<0xFF800000> : vector<8xf32>
    %52 = vector.multi_reduction <maximumf>, %51, %cst_30 [0] : vector<8x8xf32> to vector<8xf32>
    %53 = vector.shape_cast %52 : vector<8xf32> to vector<1x8xf32>
    %54 = vector.broadcast %53 : vector<1x8xf32> to vector<8x8xf32>
    %55 = arith.subf %51, %54 : vector<8x8xf32>
    %56 = math.exp %55 : vector<8x8xf32>
    %cst_31 = arith.constant dense<0.000000e+00> : vector<8xf32>
    %57 = vector.multi_reduction <add>, %56, %cst_31 [0] : vector<8x8xf32> to vector<8xf32>
    %58 = vector.shape_cast %57 : vector<8xf32> to vector<1x8xf32>
    %59 = vector.broadcast %58 : vector<1x8xf32> to vector<8x8xf32>
    %60 = arith.divf %56, %59 : vector<8x8xf32>
    %c0_32 = arith.constant 0 : index
    %c2 = arith.constant 2 : index
    %c0_33 = arith.constant 0 : index
    %c0_34 = arith.constant 0 : index
    %61 = vector.load %arg8[%c0_32, %c2, %c0_33, %c0_34] : memref<1x4x8x8xf32, #tpu.memory_space<vmem>>, vector<1x1x8x8xf32>
    %62 = vector.shape_cast %61 : vector<1x1x8x8xf32> to vector<8x8xf32>
    %63 = vector.shape_cast %60 : vector<8x8xf32> to vector<1x1x8x8xf32>
    tpu.vector_store %arg8[%c0_32, %c2, %c0_33, %c0_34], %63 {strides = array<i32>} : memref<1x4x8x8xf32, #tpu.memory_space<vmem>>, vector<1x1x8x8xf32>,
    %64 = vector.extract_strided_slice %6 {offsets = [0, 96], sizes = [8, 32], strides = [1, 1]} : vector<8x128xf32> to vector<8x32xf32>
    %65 = arith.truncf %64 : vector<8x32xf32> to vector<8x32xbf16>
    %cst_35 = arith.constant dense<0.000000e+00> : vector<8x8xf32>
    %66 = tpu.matmul %17, %65, %cst_35 {dimension_numbers = #tpu.dot_dimension_numbers<[1], [1], [0], [0], [0, 0, 1, 0], [], []>} : vector<8x32xbf16>, vector<8x32xbf16>, vector<8x8xf32> -> vector<8x8xf32>
    %cst_36 = arith.constant dense<0xFF800000> : vector<8xf32>
    %67 = vector.multi_reduction <maximumf>, %66, %cst_36 [0] : vector<8x8xf32> to vector<8xf32>
    %68 = vector.shape_cast %67 : vector<8xf32> to vector<1x8xf32>
    %69 = vector.broadcast %68 : vector<1x8xf32> to vector<8x8xf32>
    %70 = arith.subf %66, %69 : vector<8x8xf32>
    %71 = math.exp %70 : vector<8x8xf32>
    %cst_37 = arith.constant dense<0.000000e+00> : vector<8xf32>
    %72 = vector.multi_reduction <add>, %71, %cst_37 [0] : vector<8x8xf32> to vector<8xf32>
    %73 = vector.shape_cast %72 : vector<8xf32> to vector<1x8xf32>
    %74 = vector.broadcast %73 : vector<1x8xf32> to vector<8x8xf32>
    %75 = arith.divf %71, %74 : vector<8x8xf32>
    %c0_38 = arith.constant 0 : index
    %c3 = arith.constant 3 : index
    %c0_39 = arith.constant 0 : index
    %c0_40 = arith.constant 0 : index
    %76 = vector.load %arg8[%c0_38, %c3, %c0_39, %c0_40] : memref<1x4x8x8xf32, #tpu.memory_space<vmem>>, vector<1x1x8x8xf32>
    %77 = vector.shape_cast %76 : vector<1x1x8x8xf32> to vector<8x8xf32>
    %78 = vector.shape_cast %75 : vector<8x8xf32> to vector<1x1x8x8xf32>
    tpu.vector_store %arg8[%c0_38, %c3, %c0_39, %c0_40], %78 {strides = array<i32>} : memref<1x4x8x8xf32, #tpu.memory_space<vmem>>, vector<1x1x8x8xf32>,
    %c0_41 = arith.constant 0 : index
    %c0_42 = arith.constant 0 : index
    %c0_43 = arith.constant 0 : index
    %c0_44 = arith.constant 0 : index
    %79 = vector.load %arg8[%c0_41, %c0_42, %c0_43, %c0_44] : memref<1x4x8x8xf32, #tpu.memory_space<vmem>>, vector<1x4x8x8xf32>
    %80 = vector.shape_cast %79 : vector<1x4x8x8xf32> to vector<4x8x8xf32>
    %81 = vector.shape_cast %80 : vector<4x8x8xf32> to vector<32x8xf32>
    %82 = arith.truncf %81 : vector<32x8xf32> to vector<32x8xbf16>
    %cst_45 = arith.constant dense<0.000000e+00> : vector<32x32xf32>
    %83 = tpu.matmul %82, %18, %cst_45 {dimension_numbers = #tpu.dot_dimension_numbers<[1], [0], [0], [1], [0, 0, 1, 1], [], []>} : vector<32x8xbf16>, vector<8x32xbf16>, vector<32x32xf32> -> vector<32x32xf32>
    %84 = vector.shape_cast %83 : vector<32x32xf32> to vector<4x8x32xf32>
    %c0_46 = arith.constant 0 : index
    %c0_47 = arith.constant 0 : index
    %c0_48 = arith.constant 0 : index
    %c0_49 = arith.constant 0 : index
    %85 = vector.load %arg9[%c0_46, %c0_47, %c0_48, %c0_49] : memref<1x4x8x32xf32, #tpu.memory_space<vmem>>, vector<1x4x8x32xf32>
    %86 = vector.shape_cast %85 : vector<1x4x8x32xf32> to vector<4x8x32xf32>
    %87 = vector.shape_cast %84 : vector<4x8x32xf32> to vector<1x4x8x32xf32>
    tpu.vector_store %arg9[%c0_46, %c0_47, %c0_48, %c0_49], %87 {strides = array<i32>} : memref<1x4x8x32xf32, #tpu.memory_space<vmem>>, vector<1x4x8x32xf32>,
    return
  }
  func.func @transform_0(%arg0: i32) -> (i32, i32, i32) {
    %c0_i32 = arith.constant 0 : i32
    %c0_i32_0 = arith.constant 0 : i32
    %c0_i32_1 = arith.constant 0 : i32
    return %arg0, %c0_i32, %c0_i32_0 : i32, i32, i32
  }
  func.func @transform_1(%arg0: i32) -> (i32, i32) {
    %c0_i32 = arith.constant 0 : i32
    %c0_i32_0 = arith.constant 0 : i32
    %c0_i32_1 = arith.constant 0 : i32
    return %c0_i32, %c0_i32_0 : i32, i32
  }
  func.func @transform_2(%arg0: i32) -> (i32, i32) {
    %c0_i32 = arith.constant 0 : i32
    %c0_i32_0 = arith.constant 0 : i32
    %c0_i32_1 = arith.constant 0 : i32
    return %c0_i32, %c0_i32_0 : i32, i32
  }
  func.func @transform_3(%arg0: i32) -> (i32, i32) {
    %c0_i32 = arith.constant 0 : i32
    %c0_i32_0 = arith.constant 0 : i32
    %c0_i32_1 = arith.constant 0 : i32
    return %c0_i32, %c0_i32_0 : i32, i32
  }
  func.func @transform_4(%arg0: i32) -> (i32, i32) {
    %c0_i32 = arith.constant 0 : i32
    %c0_i32_0 = arith.constant 0 : i32
    %c0_i32_1 = arith.constant 0 : i32
    return %c0_i32, %c0_i32_0 : i32, i32
  }
  func.func @transform_5(%arg0: i32) -> (i32, i32) {
    %c0_i32 = arith.constant 0 : i32
    %c0_i32_0 = arith.constant 0 : i32
    %c0_i32_1 = arith.constant 0 : i32
    return %c0_i32, %c0_i32_0 : i32, i32
  }
  func.func @transform_6(%arg0: i32) -> (i32, i32) {
    %c0_i32 = arith.constant 0 : i32
    %c0_i32_0 = arith.constant 0 : i32
    %c0_i32_1 = arith.constant 0 : i32
    return %c0_i32, %c0_i32_0 : i32, i32
  }
  func.func @transform_7(%arg0: i32) -> (i32, i32, i32, i32) {
    %c0_i32 = arith.constant 0 : i32
    %c0_i32_0 = arith.constant 0 : i32
    %c0_i32_1 = arith.constant 0 : i32
    %c0_i32_2 = arith.constant 0 : i32
    return %arg0, %c0_i32, %c0_i32_0, %c0_i32_1 : i32, i32, i32, i32
  }
  func.func @transform_8(%arg0: i32) -> (i32, i32, i32, i32) {
    %c0_i32 = arith.constant 0 : i32
    %c0_i32_0 = arith.constant 0 : i32
    %c0_i32_1 = arith.constant 0 : i32
    %c0_i32_2 = arith.constant 0 : i32
    return %arg0, %c0_i32, %c0_i32_0, %c0_i32_1 : i32, i32, i32, i32
  }
}

</mosaic_0001>

<bundles_post_ra>
// kernel: tpu_custom_call.1
= control target key start
LH: loop header
LB: loop body
LE: loop exit
PB: predicated region body
PF: predicated region fallthrough
CT: control target
= control target key end

     0   :  { %s1889_s0 = inlined_call_operand.hbm [shape: bf16[2,8,32], index: 0, kind: input, shape index: {}]   ;;  %s1890_s1 = inlined_call_operand.hbm [shape: bf16[32,128], index: 1, kind: input, shape index: {}]   ;;  %s1891_s2 = inlined_call_operand.vmem [shape: f32[1,128], index: 2, kind: input, shape index: {}]   ;;  %s1892_s3 = inlined_call_operand.hbm [shape: bf16[32,32], index: 3, kind: input, shape index: {}]   ;;  %s1893_s4 = inlined_call_operand.vmem [shape: f32[1,32], index: 4, kind: input, shape index: {}]   ;;  %s1894_s5 = inlined_call_operand.hbm [shape: bf16[32,32], index: 5, kind: input, shape index: {}]   ;;  %s1895_s6 = inlined_call_operand.vmem [shape: f32[1,32], index: 6, kind: input, shape index: {}]   ;;  %s1896_s7 = inlined_call_operand.hbm [shape: f32[2,4,8,8], index: 7, kind: output, shape index: {0}]   ;;  %s1897_s8 = inlined_call_operand.hbm [shape: f32[2,4,8,32], index: 8, kind: output, shape index: {1}]  }
   0x1   :  { %1902 = sst [smem:[#allocation18_spill]] %s1890_s1 }
   0x2   :  { %1903 = sst [smem:[#allocation19_spill]] %s1892_s3 }
   0x3   :  { %1904 = sst [smem:[#allocation20_spill]] %s1894_s5 }
   0x4   :  { %14 = vsyncpa [#allocation3], 0 }
   0x5   :  { %16 = vsyncpa [#allocation3 + $0x1], 0 }
   0x6   :  { %17 = vsyncpa [#allocation6], 0 }
   0x7   :  { %18 = vsyncpa [#allocation9], 0 }
   0x8   :  { %19 = vsyncpa [#allocation4], 0 }
   0x9   :  { %21 = vsyncpa [#allocation4 + $0x1], 0 }
   0xa   :  { %22 = vsyncpa [#allocation12], 0 }
   0xb   :  { %24 = vsyncpa [#allocation12 + $0x1], 0  ;;  %s1582_s27 = smov 0   ;;  %s1584_s28 = smov 0  }
   0xc   :  { %s1586_s29 = smov 0   ;;  %s1588_s30 = smov 0  }
   0xd LB: > { %s1603_s9 = sadd.s32 4294967295, %s1520_s30   ;;  %s1078_s10 = sadd.s32 4294967294, %s1520_s30   ;;  %s1520_s30 = sphi %s1588_s30, %s1927_s30   ;;  %s1516_s29 = sphi %s1586_s29, %s1926_s29   ;;  %s1512_s28 = sphi %s1584_s28, %s1925_s28   ;;  %s1508_s27 = sphi %s1582_s27, %s1924_s27  }
   0xe   : > { %p50_p0 = scmp.ne.s32.totalorder %s1512_s28, %s1508_s27  ;;  %p1898_p1 = scmp.eq.s32.totalorder %s1603_s9, 0 }
   0xf   : > { %p206_p3 = scmp.eq.s32.totalorder %s1078_s10, 1  ;;  %p1079_p5 = scmp.ge.s32.totalorder %s1520_s30, 1 }
  0x10   : > { %p1612_p4 = por %p1898_p1, %p50_p0  ;;  %p239_p7 = scmp.lt.s32.totalorder %s1520_s30, 3 }
  0x11   : > { %p1617_p6 = por %p206_p3, %p50_p0  ;;  %s1522_s14 = smov [#allocation5]  }
  0x12   : > { %s1905_s11 = scalar_select %p1612_p4, 1, 0 }
  0x13   : > { %s1906_s12 = scalar_select %p1617_p6, 1, 0 }
  0x14   : > { %p1622_p8 = pnand %p1079_p5, %p239_p7  ;;  %s251_s15 = sshll.u32 %s1522_s14, 4  ;;  %s252_s15 = int_to_ptr.vmem [resolvable:$true] %s251_s15 }
  0x15   : > { %s1523_s17 = smov [#allocation7]   ;;  %s1524_s19 = smov [#allocation8]  }
  0x16   : > { %s1907_s13 = scalar_select %p1622_p8, 1, 0 }
  0x17   : > { %p1217_p9 = pneg %p1622_p8  ;;  %s267_s18 = sshll.u32 %s1523_s17, 4  ;;  %s268_s18 = int_to_ptr.vmem [resolvable:$true] %s267_s18 }
  0x18   : > { %s283_s20 = sshll.u32 %s1524_s19, 4  ;;  %s1323_s21 = scalar_lea.vmem %s252_s15, 256  ;;  %s284_s20 = int_to_ptr.vmem [resolvable:$true] %s283_s20 }
  0x19   : > { %p1631_p11 = pnand %p1217_p9, %p1898_p1  ;;  %p1324_p13 = scmp.ne.s32.totalorder %s252_s15, %s1323_s21 }
  0x1a   : > { %p1331_p5 = scmp.lt.s32.totalorder %s252_s15, %s252_s15  ;;  %p1332_p7 = scmp.lt.s32.totalorder %s1323_s21, %s1323_s21 }
  0x1b   : > { %p1314_p12 = pneg %p1631_p11 }
  0x1c   : > { %p1333_p9 = por %p1332_p7, %p1331_p5 }
  0x1d   : > { %p1326_p0 = pnand %p1324_p13, %p1314_p12 }
  0x1f   : > { %p1327_p3 = pneg %p1326_p0 }
  0x21   : > { %p1334_p10 = pnand %p1333_p9, %p1327_p3 }
  0x23   : > { %1337 = shalt.err (!%p1334_p10)
}
  0x24   : > { %s1525_s22 = smov 64   ;;  %s1526_s23 = smov 4  }
  0x25   : > { %s1909_s1 = sld [smem:[#allocation18_spill]]  ;;  %s1349_s26 = scalar_lea.vmem %s268_s18, 256 }
  0x26   : > { %p1350_p1 = scmp.ne.s32.totalorder %s268_s18, %s1349_s26  ;;  %p1357_p2 = scmp.lt.s32.totalorder %s268_s18, %s268_s18 }
  0x27   : > { %p1358_p6 = scmp.lt.s32.totalorder %s1349_s26, %s1349_s26 }
  0x28   : > { %p1352_p13 = pnand %p1350_p1, %p1314_p12 }
  0x29   : > { %p1359_p5 = por %p1358_p6, %p1357_p2 }
  0x2a   : > { %p1353_p0 = pneg %p1352_p13 }
  0x2b   : > { %1220 = dma.hbm_to_vmem [thread:$0]  (!%p1631_p11), %s1909_s1, 256, %s252_s15, [#allocation6], %s1525_s22, %s1525_s22, %s1526_s23  }
  0x2c   : > { %p1360_p3 = pnand %p1359_p5, %p1353_p0 }
  0x2e   : > { %1363 = shalt.err (!%p1360_p3)
}
  0x2f   : > { %s1910_s3 = sld [smem:[#allocation19_spill]]  ;;  %s1375_s15 = scalar_lea.vmem %s284_s20, 256 }
  0x30   : > { %p1376_p10 = scmp.ne.s32.totalorder %s284_s20, %s1375_s15  ;;  %p1383_p9 = scmp.lt.s32.totalorder %s284_s20, %s284_s20 }
  0x31   : > { %p1384_p13 = scmp.lt.s32.totalorder %s1375_s15, %s1375_s15 }
  0x32   : > { %p1378_p7 = pnand %p1376_p10, %p1314_p12 }
  0x33   : > { %p1385_p4 = por %p1384_p13, %p1383_p9 }
  0x34   : > { %p1379_p1 = pneg %p1378_p7 }
  0x35   : > { %1223 = dma.hbm_to_vmem [thread:$0]  (!%p1631_p11), %s1910_s3, 256, %s268_s18, [#allocation6], %s1525_s22, %s1525_s22, %s1526_s23  }
  0x36   : > { %p1386_p2 = pnand %p1385_p4, %p1379_p1 }
  0x38   : > { %1389 = shalt.err (!%p1386_p2)
}
  0x39   : > { %s1911_s5 = sld [smem:[#allocation20_spill]]  ;;  %s1662_s18 = sadd.s32 1, %s1520_s30  }
  0x3a   : > { %s34_s21 = ssub.s32 %s1520_s30, %s1662_s18  ;;  %s37_s16 = sadd.s32 1, %s1516_s29 }
  0x3b   : > { %p35_p4 = scmp.eq.s32.totalorder %s34_s21, 0  ;;  %p44_p6 = scmp.ne.s32.totalorder %s1516_s29, %s1512_s28 }
  0x3c   : > { %p45_p12 = scmp.eq.s32.totalorder %s1520_s30, 0  ;;  %p1241_p0 = scmp.lt.s32.totalorder %s1520_s30, 2 }
  0x3d   : > { %s1672_s24 = scalar_select %p35_p4, %s1516_s29, %s37_s16  }
  0x3e   : > { %p46_p5 = por %p45_p12, %p44_p6  ;;  %p1912_p3 = scmp.eq.s32.totalorder %s1603_s9, 1 }
  0x3f   : > { %1226 = dma.hbm_to_vmem [thread:$0]  (!%p1631_p11), %s1911_s5, 256, %s284_s20, [#allocation9], %s1525_s22, %s1525_s22, %s1526_s23  }
  0x40   : > { %p1676_p10 = por %p1912_p3, %p44_p6  ;;  %s300_s26 = sand.u32 1, %s1516_s29  }
  0x41   : > { %s1085_s10 = sshll.u32 %s1520_s30, 6  ;;  %s1084_s20 = sshll.u32 %s300_s26, 2 }
  0x42   : > { %s1913_s25 = scalar_select %p1676_p10, 1, 0 }
  0x43   : > { %s1685_s14 = scalar_lea.hbm %s1889_s0, %s1085_s10  ;;  %s304_s15 = scalar_lea.vmem [#allocation2], %s1084_s20 }
  0x44   : > { %s311_s17 = sshll.u32 %s304_s15, 4  ;;  %p1687_p11 = pnand %p1241_p0, %p46_p5  ;;  %s312_s17 = int_to_ptr.vmem [resolvable:$true] %s311_s17 }
  0x45   : > { %s301_s21 = scalar_lea.sflag [#allocation3], %s300_s26  ;;  %s1390_s16 = scalar_lea.hbm %s1685_s14, 64 }
  0x46   : > { %p1391_p7 = scmp.ne.s32.totalorder %s1685_s14, %s1390_s16  ;;  %p1392_p1 = pneg %p1687_p11 }
  0x47   : > { %s1395_s23 = scalar_lea.hbm %s1889_s0, 128  ;;  %p1396_p2 = scmp.lt.s32.totalorder %s1685_s14, %s1889_s0 }
  0x48   : > { %p1393_p9 = pnand %p1392_p1, %p1391_p7  ;;  %p1397_p4 = scmp.lt.s32.totalorder %s1395_s23, %s1390_s16 }
  0x4a   : > { %p1394_p13 = pneg %p1393_p9  ;;  %p1398_p6 = por %p1397_p4, %p1396_p2 }
  0x4c   : > { %p1399_p12 = pnand %p1398_p6, %p1394_p13 }
  0x4e   : > { %1402 = shalt.err (!%p1399_p12)
}
  0x4f   : > { %s1403_s15 = scalar_lea.vmem %s312_s17, 64  ;;  %s1527_s26 = smov [#allocation2]  }
  0x50   : > { %p1404_p0 = scmp.ne.s32.totalorder %s312_s17, %s1403_s15  ;;  %s1408_s3 = sshll.u32 %s1527_s26, 4  ;;  %s1409_s3 = int_to_ptr.vmem [resolvable:$false] %s1408_s3 }
  0x51   : > { %s1410_s5 = scalar_lea.vmem %s1409_s3, 128  ;;  %p1411_p7 = scmp.lt.s32.totalorder %s312_s17, %s1409_s3 }
  0x52   : > { %p1406_p5 = pnand %p1404_p0, %p1392_p1  ;;  %p1412_p9 = scmp.lt.s32.totalorder %s1410_s5, %s1403_s15 }
  0x54   : > { %p1407_p3 = pneg %p1406_p5  ;;  %p1413_p10 = por %p1412_p9, %p1411_p7 }
  0x56   : > { %p1414_p8 = pnand %p1413_p10, %p1407_p3 }
  0x58   : > { %1417 = shalt.err (!%p1414_p8)
}
  0x59   : > { %1230 = dma.hbm_to_vmem [thread:$0]  (!%p1687_p11), %s1685_s14, 64, %s312_s17, %s301_s21  }
  0x5a   : > { %p1915_p13 = scmp.ne.s32.totalorder %s1907_s13, 0 }
  0x5b   : > { %s1708_s1 = sand.u32 (!%p1915_p13), 1, %s1512_s28   ;;  %p1916_p1 = scmp.ne.s32.totalorder (!%p1915_p13), %s1905_s11, 0 }
  0x5c   : > { %320 = sbr.rel (%p1915_p13) target bundleno = 917 (0x395), region = 48  ;;  %s1087_s16 = sshll.u32 (!%p1915_p13), %s1708_s1, 2 }
  0x5d   : > { %s323_s10 = scalar_lea.sflag (!%p1915_p13), [#allocation3], %s1708_s1  ;;  %s326_s3 = scalar_lea.vmem (!%p1915_p13), [#allocation2], %s1087_s16 }
  0x61   : > { %1487 = dma.done.wait (%p1916_p1), %s323_s10, 64  }
  0x62   : > { %1489 = vsyncadd (%p1916_p1), %s323_s10, 4294967232  ;;  %p1917_p8 = scmp.eq.s32.totalorder %s1603_s9, 0 }
  0x64   : > { %1491 = dma.done.wait (%p1917_p8), [#allocation6], 512   ;;  %p1918_p10 = pmov %p1917_p8 }
  0x65   : > { %p1919_p11 = pmov %p1917_p8 }
  0x66   : > { %1493 = vsyncadd (%p1918_p10), [#allocation6], 4294966784 }
  0x67   : > { %1495 = dma.done.wait (%p1919_p11), [#allocation9], 256   ;;  %p1920_p2 = pmov %p1917_p8 }
  0x68   : > { %v1528_v0 = vmov 0.0   ;;  %vm1529_vm0 = vmmov 0   ;;  %v1290_v1 = vld [vmem:[#allocation5 + $0x8] sm:$0xff]   ;;  %v1291_v2 = vld [vmem:[#allocation5] sm:$0xff]   ;;  %v1292_v3 = vld [vmem:[#allocation7 + $0x8] sm:$0xff]   ;;  %vm401_vm1 = vcmask 261120  }
  0x69   : > { %1497 = vsyncadd (%p1920_p2), [#allocation9], 4294967040  ;;  %1144 = vmatprep.subr.bf16.mxu0 %v1528_v0  ;;  %1148 = vmatprep.mubr.msk.bf16.mxu0 %vm1529_vm0, %v1528_v0  ;;  %v1293_v4 = vld [vmem:[#allocation7] sm:$0xff]   ;;  %v377_v5 = vld [vmem:[%s326_s3] sm:$0xf]  ;;  %s1530_s17 = smov 32  }
  0x6a   : > { %1152 = vmatprep.subr.bf16.mxu1 %v1528_v0  ;;  %1156 = vmatprep.mubr.msk.bf16.mxu1 %vm1529_vm0, %v1528_v0  ;;  %v1294_v6 = vld [vmem:[#allocation8 + $0x8] sm:$0xff]   ;;  %v1295_v7 = vld [vmem:[#allocation8] sm:$0xff]   ;;  %v1093_v8 = vld [vmem:[%s1891_s2] ss:$0 sm:$0xff]  ;;  %s1531_s19 = smov 96   ;;  %s1532_s21 = smov 64  }
  0x6b   : > { %1145 = vmatpush3.bf16.msra.mxu0 %v1290_v1  ;;  %1153 = vmatpush3.bf16.msra.mxu1 %v1292_v3  ;;  %v1097_v12 = vld [vmem:[%s1893_s4] ss:$0 sm:$0xff]  ;;  %vm852_vm2 = vcmask 1043456   ;;  %vm620_vm3 = vcmask 64512   ;;  %s1091_s20 = sshll.u32 %s1708_s1, 5  ;;  %s1122_s26 = sshll.u32 %s1603_s9, 9 }
  0x6c   : > { %1146 = vmatprep.subr.bf16.mxu0 %v1528_v0  ;;  %1154 = vmatprep.subr.bf16.mxu1 %v1528_v0  ;;  %v1101_v29 = vld [vmem:[%s1895_s6] ss:$0 sm:$0xff]  ;;  %s1773_s15 = scalar_lea.vmem [#allocation10], %s1091_s20  ;;  %s1802_s5 = scalar_lea.hbm %s1896_s7, %s1122_s26 }
  0x6d   : > { %s928_s16 = sshll.u32 %s1773_s15, 4  ;;  %s910_s11 = scalar_lea.sflag [#allocation4], %s1708_s1  ;;  %s1804_s16 = int_to_ptr.vmem [resolvable:$true] %s928_s16 }
  0x6e   : > { %s1418_s13 = scalar_lea.vmem %s1804_s16, 512  ;;  %p1921_p6 = scmp.ne.s32.totalorder %s1913_s25, 0 }
  0x6f   : > { %1147 = vmatpush3.bf16.msra.mxu0 %v1291_v2  ;;  %1155 = vmatpush3.bf16.msra.mxu1 %v1293_v4  ;;  %p1419_p4 = scmp.ne.s32.totalorder %s1804_s16, %s1418_s13  ;;  %s1533_s14 = smov [#allocation10]  }
  0x70   : > { %1160 = vmatprep.subr.bf16.mxu0 %v1528_v0  ;;  %1168 = vmatprep.subr.bf16.mxu1 %v1528_v0 }
  0x71   : > { %p1420_p12 = pnand %p1419_p4, %p1921_p6 }
  0x72   : > { %1149 = vmatmul.mubr.msk.bf16.vlgmr.msra.gmra.mxu0 %vm401_vm1, %v377_v5  ;;  %1157 = vmatmul.mubr.msk.bf16.vlgmr.msra.gmra.mxu1 %vm401_vm1, %v377_v5 }
  0x73   : > { %1164 = vmatprep.mubr.msk.bf16.mxu0 %vm1529_vm0, %v1528_v0  ;;  %1170 = vmatprep.mubr.msk.bf16.mxu1 %vm1529_vm0, %v1528_v0  ;;  %p1421_p0 = pneg %p1420_p12 }
  0x74   : > { %1161 = vmatpush3.bf16.msra.mxu0 %v1294_v6 }
  0x75   : > { %1162 = vmatprep.subr.bf16.mxu0 %v1528_v0 }
  0x78   : > { %1163 = vmatpush3.bf16.msra.mxu0 %v1295_v7 }
  0x79   : > { %1174 = vmatprep.subr.bf16.mxu0 %v1528_v0 }
  0x7b   : > { %1165 = vmatmul.mubr.msk.bf16.vlgmr.msra.gmra.mxu0 %vm401_vm1, %v377_v5 }
  0x7c   : > { %1176 = vmatprep.mubr.msk.bf16.mxu0 %vm1529_vm0, %v1528_v0 }
 0x132   : > { %v439_v9 = vpop.f32.mrf.mxu0  ;;  %v502_v14 = vpop.f32.mrf.mxu1 }
 0x133   : > { %v440_v10 = vadd.f32 %v1093_v8, %v439_v9  ;;  %v503_v17 = vadd.f32 %v1097_v12, %v502_v14 }
 0x134   : > { %v1150_v11 = vpop.f32.mrf.mxu0  ;;  %v1158_v18 = vpop.f32.mrf.mxu1 }
 0x135   : > { %v573_v13 = vpack.c.bf16 %v440_v10, %v440_v10  ;;  %v571_v21 = vpack.c.bf16 %v503_v17, %v503_v17 }
 0x136   : > { %v442_v15 = vpop.f32.mrf.mxu0  ;;  %v505_v20 = vpop.f32.mrf.mxu1 }
 0x137   : > { %774 = vrot.lane.b32.xlu1 %v573_v13, %s1530_s17  ;;  %642 = vrot.lane.b32.xlu0 %v573_v13, %s1531_s19  ;;  %v578_v16 = vsel %vm401_vm1, %v573_v13, 0  ;;  %s1422_s17 = sshll.u32 %s1533_s14, 4  ;;  %s1423_s17 = int_to_ptr.vmem [resolvable:$false] %s1422_s17 }
 0x138   : > { %v1151_v19 = vpop.f32.mrf.mxu0  ;;  %1169 = vmatpush3.bf16.xpose.msra.mxu1 %v578_v16  ;;  %v1159_v22 = vpop.f32.mrf.mxu1  ;;  %s1424_s19 = scalar_lea.vmem %s1423_s17, 1024  ;;  %p1425_p5 = scmp.lt.s32.totalorder %s1804_s16, %s1423_s17 }
 0x139   : > { %1180 = vmatprep.subr.bf16.mxu1 %v1528_v0  ;;  %p1426_p3 = scmp.lt.s32.totalorder %s1424_s19, %s1418_s13 }
 0x13b   : > { %708 = vrot.lane.b32.xlu0 %v573_v13, %s1532_s21  ;;  %v565_v30 = vpop.f32.mrf.mxu0  ;;  %p1427_p7 = por %p1426_p3, %p1425_p5 }
 0x13c   : > { %v566_v31 = vadd.f32 %v1101_v29, %v565_v30 }
 0x13d   : > { %v1166_v32 = vpop.f32.mrf.mxu0  ;;  %p1428_p9 = pnand %p1427_p7, %p1421_p0 }
 0x13e   : > { %v572_v33 = vpack.c.bf16 %v566_v31, %v566_v31 }
 0x13f   : > { %1171 = vmatmul.mubr.msk.bf16.vlgmr.msra.gmra.mxu1 %vm401_vm1, %v571_v21  ;;  %v568_v34 = vpop.f32.mrf.mxu0 }
 0x140   : > { %1182 = vmatprep.mubr.msk.bf16.mxu1 %vm1529_vm0, %v1528_v0  ;;  %v854_v35 = vsel %vm852_vm2, %v572_v33, 0 }
 0x141   : > { %v1167_v36 = vpop.f32.mrf.mxu0 }
 0x1a9   : > { %v643_v23 = vpop.permute.xlu0 %642  ;;  %v775_v27 = vpop.permute.xlu1 %774 }
 0x1aa   : > { %v645_v24 = vsel %vm401_vm1, %v643_v23, 0  ;;  %v777_v28 = vsel %vm401_vm1, %v775_v27, 0 }
 0x1ab   : > { %1175 = vmatpush3.bf16.xpose.msra.mxu0 %v645_v24 }
 0x1ac   : > { %1186 = vmatprep.subr.bf16.mxu0 %v1528_v0 }
 0x1ad   : > { %v709_v25 = vpop.permute.xlu0 %708 }
 0x1ae   : > { %v711_v26 = vsel %vm401_vm1, %v709_v25, 0 }
 0x1af   : > { %1181 = vmatpush3.bf16.xpose.msra.mxu1 %v711_v26 }
 0x1b0   : > { %1198 = vmatprep.subr.msk.bf16.mxu1 %vm852_vm2, %v572_v33 }
 0x1b2   : > { %1177 = vmatmul.mubr.msk.bf16.vlgmr.msra.gmra.mxu0 %vm401_vm1, %v571_v21 }
 0x1b3   : > { %1187 = vmatpush3.bf16.xpose.msra.mxu0 %v777_v28  ;;  %1188 = vmatprep.mubr.msk.bf16.mxu0 %vm1529_vm0, %v1528_v0 }
 0x1b6   : > { %1183 = vmatmul.mubr.msk.bf16.vlgmr.msra.gmra.mxu1 %vm401_vm1, %v571_v21 }
 0x1b7   : > { %1193 = vmatpush3.bf16.msra.mxu1 %v854_v35 }
 0x1ba   : > { %1189 = vmatmul.mubr.msk.bf16.vlgmr.msra.gmra.mxu0 %vm401_vm1, %v571_v21 }
 0x1ff   : > { %v614_v37 = vpop.f32.mrf.mxu1 }
 0x200   : > { %v621_v38 = vsel %vm620_vm3, %v614_v37, -inf }
 0x201   : > { %v622_v39 = vrot.slane %v621_v38, 4  ;;  %v1172_v40 = vpop.f32.mrf.mxu1 }
 0x203   : > { %v623_v41 = vmax.f32 %v621_v38, %v622_v39  ;;  %v617_v42 = vpop.f32.mrf.mxu1 }
 0x205   : > { %v624_v43 = vrot.slane %v623_v41, 2  ;;  %v1173_v44 = vpop.f32.mrf.mxu1 }
 0x207   : > { %v625_v45 = vmax.f32 %v623_v41, %v624_v43 }
 0x209   : > { %v626_v46 = vrot.slane %v625_v45, 1 }
 0x20b   : > { %v627_v47 = vmax.f32 %v625_v45, %v626_v46 }
 0x20d   : > { %v628_v48 = vsub.f32 %v614_v37, %v627_v47 }
 0x20f   : > { %v629_v49 = vmul.f32 1.442695, %v628_v48 }
 0x211   : > { %1296 = vpow2.f32 %v629_v49 }
 0x21e   : > { %v1297_v50 = vpop.eup %1296 }
 0x21f   : > { %v631_v51 = vsel %vm620_vm3, %v1297_v50, 0.0 }
 0x220   : > { %v632_v52 = vrot.slane %v631_v51, 4 }
 0x222   : > { %v633_v53 = vadd.f32 %v632_v52, %v631_v51 }
 0x224   : > { %v634_v54 = vrot.slane %v633_v53, 2 }
 0x226   : > { %v635_v55 = vadd.f32 %v634_v54, %v633_v53 }
 0x228   : > { %v636_v56 = vrot.slane %v635_v55, 1 }
 0x22a   : > { %v637_v57 = vadd.f32 %v636_v56, %v635_v55 }
 0x22c   : > { %1298 = vrcp.f32 %v637_v57 }
 0x239   : > { %v1299_v58 = vpop.eup %1298 }
 0x23a   : > { %v639_v59 = vmul.f32 %v1299_v58, %v1297_v50 }
 0x23c   : > { %640 = vst.msk [vmem:[%s1773_s15] sm:$0xff] %vm620_vm3, %v639_v59 }
 0x272   : > { %v681_v60 = vpop.f32.mrf.mxu0 }
 0x273   : > { %v687_v61 = vsel %vm620_vm3, %v681_v60, -inf }
 0x274   : > { %v688_v62 = vrot.slane %v687_v61, 4  ;;  %v1178_v63 = vpop.f32.mrf.mxu0 }
 0x276   : > { %v689_v0 = vmax.f32 %v687_v61, %v688_v62  ;;  %v684_v1 = vpop.f32.mrf.mxu0  ;;  %v747_v2 = vpop.f32.mrf.mxu1 }
 0x277   : > { %v753_v3 = vsel %vm620_vm3, %v747_v2, -inf  ;;  %v840_v1 = vld [vmem:[%s1773_s15] sm:$0xff] }
 0x278   : > { %v690_v4 = vrot.slane %v689_v0, 2  ;;  %v754_v5 = vrot.slane %v753_v3, 4  ;;  %v1179_v6 = vpop.f32.mrf.mxu0  ;;  %v1184_v7 = vpop.f32.mrf.mxu1 }
 0x27a   : > { %v691_v8 = vmax.f32 %v689_v0, %v690_v4  ;;  %v755_v9 = vmax.f32 %v753_v3, %v754_v5  ;;  %v750_v10 = vpop.f32.mrf.mxu1  ;;  %v813_v11 = vpop.f32.mrf.mxu0 }
 0x27b   : > { %v819_v12 = vsel %vm620_vm3, %v813_v11, -inf }
 0x27c   : > { %v692_v13 = vrot.slane %v691_v8, 1  ;;  %v756_v14 = vrot.slane %v755_v9, 2  ;;  %v820_v15 = vrot.slane %v819_v12, 4  ;;  %v1185_v16 = vpop.f32.mrf.mxu1  ;;  %v1190_v17 = vpop.f32.mrf.mxu0 }
 0x27e   : > { %v693_v18 = vmax.f32 %v691_v8, %v692_v13  ;;  %v757_v19 = vmax.f32 %v755_v9, %v756_v14  ;;  %v821_v20 = vmax.f32 %v819_v12, %v820_v15  ;;  %v816_v21 = vpop.f32.mrf.mxu0 }
 0x280   : > { %v694_v22 = vsub.f32 %v681_v60, %v693_v18  ;;  %v758_v23 = vrot.slane %v757_v19, 1  ;;  %v822_v24 = vrot.slane %v821_v20, 2  ;;  %v1191_v25 = vpop.f32.mrf.mxu0 }
 0x282   : > { %v695_v26 = vmul.f32 1.442695, %v694_v22  ;;  %v759_v27 = vmax.f32 %v757_v19, %v758_v23  ;;  %v823_v28 = vmax.f32 %v821_v20, %v822_v24 }
 0x284   : > { %1300 = vpow2.f32 %v695_v26  ;;  %v760_v29 = vsub.f32 %v747_v2, %v759_v27  ;;  %v824_v30 = vrot.slane %v823_v28, 1 }
 0x286   : > { %v761_v31 = vmul.f32 1.442695, %v760_v29  ;;  %v825_v32 = vmax.f32 %v823_v28, %v824_v30 }
 0x288   : > { %1302 = vpow2.f32 %v761_v31  ;;  %v826_v33 = vsub.f32 %v813_v11, %v825_v32 }
 0x28a   : > { %v827_v34 = vmul.f32 1.442695, %v826_v33 }
 0x28c   : > { %1304 = vpow2.f32 %v827_v34 }
 0x291   : > { %v1301_v35 = vpop.eup %1300 }
 0x292   : > { %v697_v36 = vsel %vm620_vm3, %v1301_v35, 0.0 }
 0x293   : > { %v698_v37 = vrot.slane %v697_v36, 4 }
 0x295   : > { %v1303_v38 = vpop.eup %1302  ;;  %v699_v39 = vadd.f32 %v698_v37, %v697_v36 }
 0x296   : > { %v763_v40 = vsel %vm620_vm3, %v1303_v38, 0.0 }
 0x297   : > { %v700_v41 = vrot.slane %v699_v39, 2  ;;  %v764_v42 = vrot.slane %v763_v40, 4 }
 0x299   : > { %v1305_v43 = vpop.eup %1304  ;;  %v701_v44 = vadd.f32 %v700_v41, %v699_v39  ;;  %v765_v45 = vadd.f32 %v764_v42, %v763_v40 }
 0x29a   : > { %v829_v46 = vsel %vm620_vm3, %v1305_v43, 0.0 }
 0x29b   : > { %v702_v47 = vrot.slane %v701_v44, 1  ;;  %v766_v48 = vrot.slane %v765_v45, 2  ;;  %v830_v49 = vrot.slane %v829_v46, 4 }
 0x29d   : > { %v703_v50 = vadd.f32 %v702_v47, %v701_v44  ;;  %v767_v51 = vadd.f32 %v766_v48, %v765_v45  ;;  %v831_v52 = vadd.f32 %v830_v49, %v829_v46 }
 0x29f   : > { %1306 = vrcp.f32 %v703_v50  ;;  %v768_v53 = vrot.slane %v767_v51, 1  ;;  %v832_v54 = vrot.slane %v831_v52, 2 }
 0x2a1   : > { %v769_v55 = vadd.f32 %v768_v53, %v767_v51  ;;  %v833_v56 = vadd.f32 %v832_v54, %v831_v52 }
 0x2a3   : > { %1308 = vrcp.f32 %v769_v55  ;;  %v834_v57 = vrot.slane %v833_v56, 1 }
 0x2a5   : > { %v835_v58 = vadd.f32 %v834_v57, %v833_v56 }
 0x2a7   : > { %1310 = vrcp.f32 %v835_v58 }
 0x2ac   : > { %v1307_v59 = vpop.eup %1306 }
 0x2ad   : > { %v705_v60 = vmul.f32 %v1307_v59, %v1301_v35 }
 0x2af   : > { %1107 = vst.msk [vmem:[%s1773_s15 + $0x8] sm:$0xff] %vm620_vm3, %v705_v60 }
 0x2b0   : > { %v1309_v61 = vpop.eup %1308 }
 0x2b1   : > { %v771_v62 = vmul.f32 %v1309_v61, %v1303_v38 }
 0x2b3   : > { %1109 = vst.msk [vmem:[%s1773_s15 + $0x10] sm:$0xff] %vm620_vm3, %v771_v62 }
 0x2b4   : > { %v1311_v63 = vpop.eup %1310 }
 0x2b5   : > { %v837_v0 = vmul.f32 %v1311_v63, %v1305_v43 }
 0x2b6   : > { %v841_v2 = vld [vmem:[%s1773_s15 + $0x8] sm:$0xff] }
 0x2b7   : > { %1111 = vst.msk [vmem:[%s1773_s15 + $0x18] sm:$0xff] %vm620_vm3, %v837_v0  ;;  %v844_v3 = vpack.c.bf16 %v841_v2, %v840_v1 }
 0x2b9   : > { %1194 = vmatprep.mubr.msk.bf16.mxu1 %vm620_vm3, %v844_v3 }
 0x2ba   : > { %v842_v4 = vld [vmem:[%s1773_s15 + $0x10] sm:$0xff] }
 0x2be   : > { %v843_v5 = vld [vmem:[%s1773_s15 + $0x18] sm:$0xff] }
 0x2bf   : > { %v845_v6 = vpack.c.bf16 %v843_v5, %v842_v4 }
 0x2c1   : > { %1195 = vmatmul.mubr.msk.bf16.vlgmr.msra.gmra.mxu1 %vm620_vm3, %v845_v6 }
 0x2c2   : > { %1431 = shalt.err (!%p1428_p9)
}
 0x2c3   : > { %s1432_s21 = scalar_lea.hbm %s1802_s5, 512  ;;  %s1436_s15 = scalar_lea.hbm %s1896_s7, 1024 }
 0x2c4   : > { %p1433_p13 = scmp.ne.s32.totalorder %s1802_s5, %s1432_s21  ;;  %p1437_p10 = scmp.lt.s32.totalorder %s1802_s5, %s1896_s7 }
 0x2c5   : > { %p1438_p11 = scmp.lt.s32.totalorder %s1436_s15, %s1432_s21 }
 0x2c6   : > { %p1434_p1 = pnand %p1433_p13, %p1921_p6 }
 0x2c7   : > { %p1439_p2 = por %p1438_p11, %p1437_p10 }
 0x2c8   : > { %p1435_p8 = pneg %p1434_p1 }
 0x2ca   : > { %p1440_p4 = pnand %p1439_p2, %p1435_p8 }
 0x2cc   : > { %1443 = shalt.err (!%p1440_p4)
}
 0x2cd   : > { %s1534_s13 = smov 128   ;;  %s1535_s14 = smov 8  }
 0x2ce   : > { %1213 = dma.vmem_to_hbm [thread:$0]  (%p1921_p6), %s1804_s16, 512, %s1802_s5, %s910_s11, %s1534_s13, %s1534_s13, %s1535_s14  }
 0x2cf   : > { %s375_s17 = scalar_lea.vmem [#allocation11], %s1091_s20  ;;  %s1844_s11 = scalar_lea.hbm %s1897_s8, %s1122_s26 }
 0x2d0   : > { %s944_s19 = sshll.u32 %s375_s17, 4  ;;  %s915_s20 = scalar_lea.sflag [#allocation12], %s1708_s1  ;;  %s1836_s19 = int_to_ptr.vmem [resolvable:$true] %s944_s19 }
 0x2d1   : > { %s1444_s21 = scalar_lea.vmem %s1836_s19, 512  ;;  %s1536_s22 = smov [#allocation11]  }
 0x2d2   : > { %p1445_p12 = scmp.ne.s32.totalorder %s1836_s19, %s1444_s21  ;;  %s1448_s23 = sshll.u32 %s1536_s22, 4  ;;  %s1449_s23 = int_to_ptr.vmem [resolvable:$false] %s1448_s23 }
 0x2d3   : > { %s1450_s15 = scalar_lea.vmem %s1449_s23, 1024  ;;  %p1451_p3 = scmp.lt.s32.totalorder %s1836_s19, %s1449_s23 }
 0x2d4   : > { %p1446_p0 = pnand %p1445_p12, %p1921_p6  ;;  %p1452_p7 = scmp.lt.s32.totalorder %s1450_s15, %s1444_s21 }
 0x2d6   : > { %p1447_p5 = pneg %p1446_p0  ;;  %p1453_p9 = por %p1452_p7, %p1451_p3 }
 0x2d8   : > { %p1454_p13 = pnand %p1453_p9, %p1447_p5 }
 0x381   : > { %v1196_v7 = vpop.f32.mrf.mxu1 }
 0x382   : > { %907 = vst.msk [vmem:[%s375_s17 + $0x10] sm:$0xff] %vm401_vm1, %v1196_v7 }
 0x383   : > { %v890_v8 = vpop.f32.mrf.mxu1 }
 0x384   : > { %905 = vst.msk [vmem:[%s375_s17] sm:$0xff] %vm401_vm1, %v890_v8 }
 0x385   : > { %v1197_v9 = vpop.f32.mrf.mxu1 }
 0x386   : > { %908 = vst.msk [vmem:[%s375_s17 + $0x18] sm:$0xff] %vm401_vm1, %v1197_v9 }
 0x387   : > { %v893_v10 = vpop.f32.mrf.mxu1 }
 0x388   : > { %906 = vst.msk [vmem:[%s375_s17 + $0x8] sm:$0xff] %vm401_vm1, %v893_v10 }
 0x389   : > { %1457 = shalt.err (!%p1454_p13)
}
 0x38a   : > { %s1458_s9 = scalar_lea.hbm %s1844_s11, 512  ;;  %s1462_s10 = scalar_lea.hbm %s1897_s8, 1024 }
 0x38b   : > { %p1459_p1 = scmp.ne.s32.totalorder %s1844_s11, %s1458_s9  ;;  %p1463_p11 = scmp.lt.s32.totalorder %s1844_s11, %s1897_s8 }
 0x38c   : > { %p1464_p2 = scmp.lt.s32.totalorder %s1462_s10, %s1458_s9 }
 0x38d   : > { %p1460_p8 = pnand %p1459_p1, %p1921_p6 }
 0x38e   : > { %p1465_p4 = por %p1464_p2, %p1463_p11 }
 0x38f   : > { %p1461_p10 = pneg %p1460_p8 }
 0x391   : > { %p1466_p12 = pnand %p1465_p4, %p1461_p10 }
 0x393   : > { %1469 = shalt.err (!%p1466_p12)
}
 0x394   : > { %1214 = dma.vmem_to_hbm [thread:$0]  (%p1921_p6), %s1836_s19, 512, %s1844_s11, %s915_s20, %s1534_s13, %s1534_s13, %s1535_s14  }
 0x395 PF: > { %s959_s16 = sand.u32 1, %s1508_s27   ;;  %p1922_p0 = scmp.ne.s32.totalorder %s1906_s12, 0 }
 0x396   : > { %p1923_p5 = scmp.ge.s32.totalorder %s1520_s30, 2  ;;  %s960_s5 = scalar_lea.sflag [#allocation4], %s959_s16 }
 0x398   : > { %p1232_p3 = pnand %p1923_p5, %p1922_p0 }
 0x39a   : > { %p1233_p7 = pneg %p1232_p3 }
 0x39c   : > { %1499 = dma.done.wait (%p1233_p7), %s960_s5, 512  }
 0x39d   : > { %1501 = vsyncadd (%p1233_p7), %s960_s5, 4294966784  ;;  %s969_s21 = scalar_lea.sflag [#allocation12], %s959_s16 }
 0x39e   : > { %1503 = dma.done.wait (%p1233_p7), %s969_s21, 512  }
 0x39f   : > { %1505 = vsyncadd (%p1233_p7), %s969_s21, 4294966784  ;;  %p27_p6 = scmp.ge.s32.totalorder %s1662_s18, 4   ;;  %s1924_s27 = smov %s1512_s28 }
 0x3a0   : > { %s1925_s28 = smov %s1516_s29  ;;  %s1926_s29 = smov %s1672_s24 }
 0x3a1   : > { %s1927_s30 = smov %s1662_s18  ;;  %29 = sbr.rel (!%p27_p6) target bundleno = 13 (0xd), region = 125 }
 0x3a6   :  { %974 = vsyncpa [#allocation3], 1 }
 0x3a7   :  { %976 = vsyncpa [#allocation3 + $0x1], 1 }
 0x3a8   :  { %977 = vsyncpa [#allocation6], 1 }
 0x3a9   :  { %978 = vsyncpa [#allocation9], 1 }
 0x3aa   :  { %979 = vsyncpa [#allocation4], 1 }
 0x3ab   :  { %981 = vsyncpa [#allocation4 + $0x1], 1 }
 0x3ac   :  { %982 = vsyncpa [#allocation12], 1 }
 0x3ad   :  { %984 = vsyncpa [#allocation12 + $0x1], 1 }

// kernel: tpu_custom_call.1
= control target key start
LH: loop header
LB: loop body
LE: loop exit
PB: predicated region body
PF: predicated region fallthrough
CT: control target
= control target key end

     0   :  { %s1889_s0 = inlined_call_operand.hbm [shape: bf16[2,8,32], index: 0, kind: input, shape index: {}]   ;;  %s1890_s1 = inlined_call_operand.hbm [shape: bf16[32,128], index: 1, kind: input, shape index: {}]   ;;  %s1891_s2 = inlined_call_operand.vmem [shape: f32[1,128], index: 2, kind: input, shape index: {}]   ;;  %s1892_s3 = inlined_call_operand.hbm [shape: bf16[32,32], index: 3, kind: input, shape index: {}]   ;;  %s1893_s4 = inlined_call_operand.vmem [shape: f32[1,32], index: 4, kind: input, shape index: {}]   ;;  %s1894_s5 = inlined_call_operand.hbm [shape: bf16[32,32], index: 5, kind: input, shape index: {}]   ;;  %s1895_s6 = inlined_call_operand.vmem [shape: f32[1,32], index: 6, kind: input, shape index: {}]   ;;  %s1896_s7 = inlined_call_operand.hbm [shape: f32[2,4,8,8], index: 7, kind: output, shape index: {0}]   ;;  %s1897_s8 = inlined_call_operand.hbm [shape: f32[2,4,8,32], index: 8, kind: output, shape index: {1}]  }
   0x1   :  { %1902 = sst [smem:[#allocation18_spill]] %s1890_s1 }
   0x2   :  { %1903 = sst [smem:[#allocation19_spill]] %s1892_s3 }
   0x3   :  { %1904 = sst [smem:[#allocation20_spill]] %s1894_s5 }
   0x4   :  { %14 = vsyncpa [#allocation3], 0 }
   0x5   :  { %16 = vsyncpa [#allocation3 + $0x1], 0 }
   0x6   :  { %17 = vsyncpa [#allocation6], 0 }
   0x7   :  { %18 = vsyncpa [#allocation9], 0 }
   0x8   :  { %19 = vsyncpa [#allocation4], 0 }
   0x9   :  { %21 = vsyncpa [#allocation4 + $0x1], 0 }
   0xa   :  { %22 = vsyncpa [#allocation12], 0 }
   0xb   :  { %24 = vsyncpa [#allocation12 + $0x1], 0  ;;  %s1582_s27 = smov 0   ;;  %s1584_s28 = smov 0  }
   0xc   :  { %s1586_s29 = smov 0   ;;  %s1588_s30 = smov 0  }
   0xd LB: > { %s1603_s9 = sadd.s32 4294967295, %s1520_s30   ;;  %s1078_s10 = sadd.s32 4294967294, %s1520_s30   ;;  %s1520_s30 = sphi %s1588_s30, %s1927_s30   ;;  %s1516_s29 = sphi %s1586_s29, %s1926_s29   ;;  %s1512_s28 = sphi %s1584_s28, %s1925_s28   ;;  %s1508_s27 = sphi %s1582_s27, %s1924_s27  }
   0xe   : > { %p50_p0 = scmp.ne.s32.totalorder %s1512_s28, %s1508_s27  ;;  %p1898_p1 = scmp.eq.s32.totalorder %s1603_s9, 0 }
   0xf   : > { %p206_p3 = scmp.eq.s32.totalorder %s1078_s10, 1  ;;  %p1079_p5 = scmp.ge.s32.totalorder %s1520_s30, 1 }
  0x10   : > { %p1612_p4 = por %p1898_p1, %p50_p0  ;;  %p239_p7 = scmp.lt.s32.totalorder %s1520_s30, 3 }
  0x11   : > { %p1617_p6 = por %p206_p3, %p50_p0  ;;  %s1522_s14 = smov [#allocation5]  }
  0x12   : > { %s1905_s11 = scalar_select %p1612_p4, 1, 0 }
  0x13   : > { %s1906_s12 = scalar_select %p1617_p6, 1, 0 }
  0x14   : > { %p1622_p8 = pnand %p1079_p5, %p239_p7  ;;  %s251_s15 = sshll.u32 %s1522_s14, 4  ;;  %s252_s15 = int_to_ptr.vmem [resolvable:$true] %s251_s15 }
  0x15   : > { %s1523_s17 = smov [#allocation7]   ;;  %s1524_s19 = smov [#allocation8]  }
  0x16   : > { %s1907_s13 = scalar_select %p1622_p8, 1, 0 }
  0x17   : > { %p1217_p9 = pneg %p1622_p8  ;;  %s267_s18 = sshll.u32 %s1523_s17, 4  ;;  %s268_s18 = int_to_ptr.vmem [resolvable:$true] %s267_s18 }
  0x18   : > { %s283_s20 = sshll.u32 %s1524_s19, 4  ;;  %s1323_s21 = scalar_lea.vmem %s252_s15, 256  ;;  %s284_s20 = int_to_ptr.vmem [resolvable:$true] %s283_s20 }
  0x19   : > { %p1631_p11 = pnand %p1217_p9, %p1898_p1  ;;  %p1324_p13 = scmp.ne.s32.totalorder %s252_s15, %s1323_s21 }
  0x1a   : > { %p1331_p5 = scmp.lt.s32.totalorder %s252_s15, %s252_s15  ;;  %p1332_p7 = scmp.lt.s32.totalorder %s1323_s21, %s1323_s21 }
  0x1b   : > { %p1314_p12 = pneg %p1631_p11 }
  0x1c   : > { %p1333_p9 = por %p1332_p7, %p1331_p5 }
  0x1d   : > { %p1326_p0 = pnand %p1324_p13, %p1314_p12 }
  0x1f   : > { %p1327_p3 = pneg %p1326_p0 }
  0x21   : > { %p1334_p10 = pnand %p1333_p9, %p1327_p3 }
  0x23   : > { %1337 = shalt.err (!%p1334_p10)
}
  0x24   : > { %s1525_s22 = smov 64   ;;  %s1526_s23 = smov 4  }
  0x25   : > { %s1909_s1 = sld [smem:[#allocation18_spill]]  ;;  %s1349_s26 = scalar_lea.vmem %s268_s18, 256 }
  0x26   : > { %p1350_p1 = scmp.ne.s32.totalorder %s268_s18, %s1349_s26  ;;  %p1357_p2 = scmp.lt.s32.totalorder %s268_s18, %s268_s18 }
  0x27   : > { %p1358_p6 = scmp.lt.s32.totalorder %s1349_s26, %s1349_s26 }
  0x28   : > { %p1352_p13 = pnand %p1350_p1, %p1314_p12 }
  0x29   : > { %p1359_p5 = por %p1358_p6, %p1357_p2 }
  0x2a   : > { %p1353_p0 = pneg %p1352_p13 }
  0x2b   : > { %1220 = dma.hbm_to_vmem [thread:$0]  (!%p1631_p11), %s1909_s1, 256, %s252_s15, [#allocation6], %s1525_s22, %s1525_s22, %s1526_s23  }
  0x2c   : > { %p1360_p3 = pnand %p1359_p5, %p1353_p0 }
  0x2e   : > { %1363 = shalt.err (!%p1360_p3)
}
  0x2f   : > { %s1910_s3 = sld [smem:[#allocation19_spill]]  ;;  %s1375_s15 = scalar_lea.vmem %s284_s20, 256 }
  0x30   : > { %p1376_p10 = scmp.ne.s32.totalorder %s284_s20, %s1375_s15  ;;  %p1383_p9 = scmp.lt.s32.totalorder %s284_s20, %s284_s20 }
  0x31   : > { %p1384_p13 = scmp.lt.s32.totalorder %s1375_s15, %s1375_s15 }
  0x32   : > { %p1378_p7 = pnand %p1376_p10, %p1314_p12 }
  0x33   : > { %p1385_p4 = por %p1384_p13, %p1383_p9 }
  0x34   : > { %p1379_p1 = pneg %p1378_p7 }
  0x35   : > { %1223 = dma.hbm_to_vmem [thread:$0]  (!%p1631_p11), %s1910_s3, 256, %s268_s18, [#allocation6], %s1525_s22, %s1525_s22, %s1526_s23  }
  0x36   : > { %p1386_p2 = pnand %p1385_p4, %p1379_p1 }
  0x38   : > { %1389 = shalt.err (!%p1386_p2)
}
  0x39   : > { %s1911_s5 = sld [smem:[#allocation20_spill]]  ;;  %s1662_s18 = sadd.s32 1, %s1520_s30  }
  0x3a   : > { %s34_s21 = ssub.s32 %s1520_s30, %s1662_s18  ;;  %s37_s16 = sadd.s32 1, %s1516_s29 }
  0x3b   : > { %p35_p4 = scmp.eq.s32.totalorder %s34_s21, 0  ;;  %p44_p6 = scmp.ne.s32.totalorder %s1516_s29, %s1512_s28 }
  0x3c   : > { %p45_p12 = scmp.eq.s32.totalorder %s1520_s30, 0  ;;  %p1241_p0 = scmp.lt.s32.totalorder %s1520_s30, 2 }
  0x3d   : > { %s1672_s24 = scalar_select %p35_p4, %s1516_s29, %s37_s16  }
  0x3e   : > { %p46_p5 = por %p45_p12, %p44_p6  ;;  %p1912_p3 = scmp.eq.s32.totalorder %s1603_s9, 1 }
  0x3f   : > { %1226 = dma.hbm_to_vmem [thread:$0]  (!%p1631_p11), %s1911_s5, 256, %s284_s20, [#allocation9], %s1525_s22, %s1525_s22, %s1526_s23  }
  0x40   : > { %p1676_p10 = por %p1912_p3, %p44_p6  ;;  %s300_s26 = sand.u32 1, %s1516_s29  }
  0x41   : > { %s1085_s10 = sshll.u32 %s1520_s30, 6  ;;  %s1084_s20 = sshll.u32 %s300_s26, 2 }
  0x42   : > { %s1913_s25 = scalar_select %p1676_p10, 1, 0 }
  0x43   : > { %s1685_s14 = scalar_lea.hbm %s1889_s0, %s1085_s10  ;;  %s304_s15 = scalar_lea.vmem [#allocation2], %s1084_s20 }
  0x44   : > { %s311_s17 = sshll.u32 %s304_s15, 4  ;;  %p1687_p11 = pnand %p1241_p0, %p46_p5  ;;  %s312_s17 = int_to_ptr.vmem [resolvable:$true] %s311_s17 }
  0x45   : > { %s301_s21 = scalar_lea.sflag [#allocation3], %s300_s26  ;;  %s1390_s16 = scalar_lea.hbm %s1685_s14, 64 }
  0x46   : > { %p1391_p7 = scmp.ne.s32.totalorder %s1685_s14, %s1390_s16  ;;  %p1392_p1 = pneg %p1687_p11 }
  0x47   : > { %s1395_s23 = scalar_lea.hbm %s1889_s0, 128  ;;  %p1396_p2 = scmp.lt.s32.totalorder %s1685_s14, %s1889_s0 }
  0x48   : > { %p1393_p9 = pnand %p1392_p1, %p1391_p7  ;;  %p1397_p4 = scmp.lt.s32.totalorder %s1395_s23, %s1390_s16 }
  0x4a   : > { %p1394_p13 = pneg %p1393_p9  ;;  %p1398_p6 = por %p1397_p4, %p1396_p2 }
  0x4c   : > { %p1399_p12 = pnand %p1398_p6, %p1394_p13 }
  0x4e   : > { %1402 = shalt.err (!%p1399_p12)
}
  0x4f   : > { %s1403_s15 = scalar_lea.vmem %s312_s17, 64  ;;  %s1527_s26 = smov [#allocation2]  }
  0x50   : > { %p1404_p0 = scmp.ne.s32.totalorder %s312_s17, %s1403_s15  ;;  %s1408_s3 = sshll.u32 %s1527_s26, 4  ;;  %s1409_s3 = int_to_ptr.vmem [resolvable:$false] %s1408_s3 }
  0x51   : > { %s1410_s5 = scalar_lea.vmem %s1409_s3, 128  ;;  %p1411_p7 = scmp.lt.s32.totalorder %s312_s17, %s1409_s3 }
  0x52   : > { %p1406_p5 = pnand %p1404_p0, %p1392_p1  ;;  %p1412_p9 = scmp.lt.s32.totalorder %s1410_s5, %s1403_s15 }
  0x54   : > { %p1407_p3 = pneg %p1406_p5  ;;  %p1413_p10 = por %p1412_p9, %p1411_p7 }
  0x56   : > { %p1414_p8 = pnand %p1413_p10, %p1407_p3 }
  0x58   : > { %1417 = shalt.err (!%p1414_p8)
}
  0x59   : > { %1230 = dma.hbm_to_vmem [thread:$0]  (!%p1687_p11), %s1685_s14, 64, %s312_s17, %s301_s21  }
  0x5a   : > { %p1915_p13 = scmp.ne.s32.totalorder %s1907_s13, 0 }
  0x5b   : > { %s1708_s1 = sand.u32 (!%p1915_p13), 1, %s1512_s28   ;;  %p1916_p1 = scmp.ne.s32.totalorder (!%p1915_p13), %s1905_s11, 0 }
  0x5c   : > { %320 = sbr.rel (%p1915_p13) target bundleno = 917 (0x395), region = 48  ;;  %s1087_s16 = sshll.u32 (!%p1915_p13), %s1708_s1, 2 }
  0x5d   : > { %s323_s10 = scalar_lea.sflag (!%p1915_p13), [#allocation3], %s1708_s1  ;;  %s326_s3 = scalar_lea.vmem (!%p1915_p13), [#allocation2], %s1087_s16 }
  0x61   : > { %1487 = dma.done.wait (%p1916_p1), %s323_s10, 64  }
  0x62   : > { %1489 = vsyncadd (%p1916_p1), %s323_s10, 4294967232  ;;  %p1917_p8 = scmp.eq.s32.totalorder %s1603_s9, 0 }
  0x64   : > { %1491 = dma.done.wait (%p1917_p8), [#allocation6], 512   ;;  %p1918_p10 = pmov %p1917_p8 }
  0x65   : > { %p1919_p11 = pmov %p1917_p8 }
  0x66   : > { %1493 = vsyncadd (%p1918_p10), [#allocation6], 4294966784 }
  0x67   : > { %1495 = dma.done.wait (%p1919_p11), [#allocation9], 256   ;;  %p1920_p2 = pmov %p1917_p8 }
  0x68   : > { %v1528_v0 = vmov 0.0   ;;  %vm1529_vm0 = vmmov 0   ;;  %v1290_v1 = vld [vmem:[#allocation5 + $0x8] sm:$0xff]   ;;  %v1291_v2 = vld [vmem:[#allocation5] sm:$0xff]   ;;  %v1292_v3 = vld [vmem:[#allocation7 + $0x8] sm:$0xff]   ;;  %vm401_vm1 = vcmask 261120  }
  0x69   : > { %1497 = vsyncadd (%p1920_p2), [#allocation9], 4294967040  ;;  %1144 = vmatprep.subr.bf16.mxu0 %v1528_v0  ;;  %1148 = vmatprep.mubr.msk.bf16.mxu0 %vm1529_vm0, %v1528_v0  ;;  %v1293_v4 = vld [vmem:[#allocation7] sm:$0xff]   ;;  %v377_v5 = vld [vmem:[%s326_s3] sm:$0xf]  ;;  %s1530_s17 = smov 32  }
  0x6a   : > { %1152 = vmatprep.subr.bf16.mxu1 %v1528_v0  ;;  %1156 = vmatprep.mubr.msk.bf16.mxu1 %vm1529_vm0, %v1528_v0  ;;  %v1294_v6 = vld [vmem:[#allocation8 + $0x8] sm:$0xff]   ;;  %v1295_v7 = vld [vmem:[#allocation8] sm:$0xff]   ;;  %v1093_v8 = vld [vmem:[%s1891_s2] ss:$0 sm:$0xff]  ;;  %s1531_s19 = smov 96   ;;  %s1532_s21 = smov 64  }
  0x6b   : > { %1145 = vmatpush3.bf16.msra.mxu0 %v1290_v1  ;;  %1153 = vmatpush3.bf16.msra.mxu1 %v1292_v3  ;;  %v1097_v12 = vld [vmem:[%s1893_s4] ss:$0 sm:$0xff]  ;;  %vm852_vm2 = vcmask 1043456   ;;  %vm620_vm3 = vcmask 64512   ;;  %s1091_s20 = sshll.u32 %s1708_s1, 5  ;;  %s1122_s26 = sshll.u32 %s1603_s9, 9 }
  0x6c   : > { %1146 = vmatprep.subr.bf16.mxu0 %v1528_v0  ;;  %1154 = vmatprep.subr.bf16.mxu1 %v1528_v0  ;;  %v1101_v29 = vld [vmem:[%s1895_s6] ss:$0 sm:$0xff]  ;;  %s1773_s15 = scalar_lea.vmem [#allocation10], %s1091_s20  ;;  %s1802_s5 = scalar_lea.hbm %s1896_s7, %s1122_s26 }
  0x6d   : > { %s928_s16 = sshll.u32 %s1773_s15, 4  ;;  %s910_s11 = scalar_lea.sflag [#allocation4], %s1708_s1  ;;  %s1804_s16 = int_to_ptr.vmem [resolvable:$true] %s928_s16 }
  0x6e   : > { %s1418_s13 = scalar_lea.vmem %s1804_s16, 512  ;;  %p1921_p6 = scmp.ne.s32.totalorder %s1913_s25, 0 }
  0x6f   : > { %1147 = vmatpush3.bf16.msra.mxu0 %v1291_v2  ;;  %1155 = vmatpush3.bf16.msra.mxu1 %v1293_v4  ;;  %p1419_p4 = scmp.ne.s32.totalorder %s1804_s16, %s1418_s13  ;;  %s1533_s14 = smov [#allocation10]  }
  0x70   : > { %1160 = vmatprep.subr.bf16.mxu0 %v1528_v0  ;;  %1168 = vmatprep.subr.bf16.mxu1 %v1528_v0 }
  0x71   : > { %p1420_p12 = pnand %p1419_p4, %p1921_p6 }
  0x72   : > { %1149 = vmatmul.mubr.msk.bf16.vlgmr.msra.gmra.mxu0 %vm401_vm1, %v377_v5  ;;  %1157 = vmatmul.mubr.msk.bf16.vlgmr.msra.gmra.mxu1 %vm401_vm1, %v377_v5 }
  0x73   : > { %1164 = vmatprep.mubr.msk.bf16.mxu0 %vm1529_vm0, %v1528_v0  ;;  %1170 = vmatprep.mubr.msk.bf16.mxu1 %vm1529_vm0, %v1528_v0  ;;  %p1421_p0 = pneg %p1420_p12 }
  0x74   : > { %1161 = vmatpush3.bf16.msra.mxu0 %v1294_v6 }
  0x75   : > { %1162 = vmatprep.subr.bf16.mxu0 %v1528_v0 }
  0x78   : > { %1163 = vmatpush3.bf16.msra.mxu0 %v1295_v7 }
  0x79   : > { %1174 = vmatprep.subr.bf16.mxu0 %v1528_v0 }
  0x7b   : > { %1165 = vmatmul.mubr.msk.bf16.vlgmr.msra.gmra.mxu0 %vm401_vm1, %v377_v5 }
  0x7c   : > { %1176 = vmatprep.mubr.msk.bf16.mxu0 %vm1529_vm0, %v1528_v0 }
 0x132   : > { %v439_v9 = vpop.f32.mrf.mxu0  ;;  %v502_v14 = vpop.f32.mrf.mxu1 }
 0x133   : > { %v440_v10 = vadd.f32 %v1093_v8, %v439_v9  ;;  %v503_v17 = vadd.f32 %v1097_v12, %v502_v14 }
 0x134   : > { %v1150_v11 = vpop.f32.mrf.mxu0  ;;  %v1158_v18 = vpop.f32.mrf.mxu1 }
 0x135   : > { %v573_v13 = vpack.c.bf16 %v440_v10, %v440_v10  ;;  %v571_v21 = vpack.c.bf16 %v503_v17, %v503_v17 }
 0x136   : > { %v442_v15 = vpop.f32.mrf.mxu0  ;;  %v505_v20 = vpop.f32.mrf.mxu1 }
 0x137   : > { %774 = vrot.lane.b32.xlu1 %v573_v13, %s1530_s17  ;;  %642 = vrot.lane.b32.xlu0 %v573_v13, %s1531_s19  ;;  %v578_v16 = vsel %vm401_vm1, %v573_v13, 0  ;;  %s1422_s17 = sshll.u32 %s1533_s14, 4  ;;  %s1423_s17 = int_to_ptr.vmem [resolvable:$false] %s1422_s17 }
 0x138   : > { %v1151_v19 = vpop.f32.mrf.mxu0  ;;  %1169 = vmatpush3.bf16.xpose.msra.mxu1 %v578_v16  ;;  %v1159_v22 = vpop.f32.mrf.mxu1  ;;  %s1424_s19 = scalar_lea.vmem %s1423_s17, 1024  ;;  %p1425_p5 = scmp.lt.s32.totalorder %s1804_s16, %s1423_s17 }
 0x139   : > { %1180 = vmatprep.subr.bf16.mxu1 %v1528_v0  ;;  %p1426_p3 = scmp.lt.s32.totalorder %s1424_s19, %s1418_s13 }
 0x13b   : > { %708 = vrot.lane.b32.xlu0 %v573_v13, %s1532_s21  ;;  %v565_v30 = vpop.f32.mrf.mxu0  ;;  %p1427_p7 = por %p1426_p3, %p1425_p5 }
 0x13c   : > { %v566_v31 = vadd.f32 %v1101_v29, %v565_v30 }
 0x13d   : > { %v1166_v32 = vpop.f32.mrf.mxu0  ;;  %p1428_p9 = pnand %p1427_p7, %p1421_p0 }
 0x13e   : > { %v572_v33 = vpack.c.bf16 %v566_v31, %v566_v31 }
 0x13f   : > { %1171 = vmatmul.mubr.msk.bf16.vlgmr.msra.gmra.mxu1 %vm401_vm1, %v571_v21  ;;  %v568_v34 = vpop.f32.mrf.mxu0 }
 0x140   : > { %1182 = vmatprep.mubr.msk.bf16.mxu1 %vm1529_vm0, %v1528_v0  ;;  %v854_v35 = vsel %vm852_vm2, %v572_v33, 0 }
 0x141   : > { %v1167_v36 = vpop.f32.mrf.mxu0 }
 0x1a9   : > { %v643_v23 = vpop.permute.xlu0 %642  ;;  %v775_v27 = vpop.permute.xlu1 %774 }
 0x1aa   : > { %v645_v24 = vsel %vm401_vm1, %v643_v23, 0  ;;  %v777_v28 = vsel %vm401_vm1, %v775_v27, 0 }
 0x1ab   : > { %1175 = vmatpush3.bf16.xpose.msra.mxu0 %v645_v24 }
 0x1ac   : > { %1186 = vmatprep.subr.bf16.mxu0 %v1528_v0 }
 0x1ad   : > { %v709_v25 = vpop.permute.xlu0 %708 }
 0x1ae   : > { %v711_v26 = vsel %vm401_vm1, %v709_v25, 0 }
 0x1af   : > { %1181 = vmatpush3.bf16.xpose.msra.mxu1 %v711_v26 }
 0x1b0   : > { %1198 = vmatprep.subr.msk.bf16.mxu1 %vm852_vm2, %v572_v33 }
 0x1b2   : > { %1177 = vmatmul.mubr.msk.bf16.vlgmr.msra.gmra.mxu0 %vm401_vm1, %v571_v21 }
 0x1b3   : > { %1187 = vmatpush3.bf16.xpose.msra.mxu0 %v777_v28  ;;  %1188 = vmatprep.mubr.msk.bf16.mxu0 %vm1529_vm0, %v1528_v0 }
 0x1b6   : > { %1183 = vmatmul.mubr.msk.bf16.vlgmr.msra.gmra.mxu1 %vm401_vm1, %v571_v21 }
 0x1b7   : > { %1193 = vmatpush3.bf16.msra.mxu1 %v854_v35 }
 0x1ba   : > { %1189 = vmatmul.mubr.msk.bf16.vlgmr.msra.gmra.mxu0 %vm401_vm1, %v571_v21 }
 0x1ff   : > { %v614_v37 = vpop.f32.mrf.mxu1 }
 0x200   : > { %v621_v38 = vsel %vm620_vm3, %v614_v37, -inf }
 0x201   : > { %v622_v39 = vrot.slane %v621_v38, 4  ;;  %v1172_v40 = vpop.f32.mrf.mxu1 }
 0x203   : > { %v623_v41 = vmax.f32 %v621_v38, %v622_v39  ;;  %v617_v42 = vpop.f32.mrf.mxu1 }
 0x205   : > { %v624_v43 = vrot.slane %v623_v41, 2  ;;  %v1173_v44 = vpop.f32.mrf.mxu1 }
 0x207   : > { %v625_v45 = vmax.f32 %v623_v41, %v624_v43 }
 0x209   : > { %v626_v46 = vrot.slane %v625_v45, 1 }
 0x20b   : > { %v627_v47 = vmax.f32 %v625_v45, %v626_v46 }
 0x20d   : > { %v628_v48 = vsub.f32 %v614_v37, %v627_v47 }
 0x20f   : > { %v629_v49 = vmul.f32 1.442695, %v628_v48 }
 0x211   : > { %1296 = vpow2.f32 %v629_v49 }
 0x21e   : > { %v1297_v50 = vpop.eup %1296 }
 0x21f   : > { %v631_v51 = vsel %vm620_vm3, %v1297_v50, 0.0 }
 0x220   : > { %v632_v52 = vrot.slane %v631_v51, 4 }
 0x222   : > { %v633_v53 = vadd.f32 %v632_v52, %v631_v51 }
 0x224   : > { %v634_v54 = vrot.slane %v633_v53, 2 }
 0x226   : > { %v635_v55 = vadd.f32 %v634_v54, %v633_v53 }
 0x228   : > { %v636_v56 = vrot.slane %v635_v55, 1 }
 0x22a   : > { %v637_v57 = vadd.f32 %v636_v56, %v635_v55 }
 0x22c   : > { %1298 = vrcp.f32 %v637_v57 }
 0x239   : > { %v1299_v58 = vpop.eup %1298 }
 0x23a   : > { %v639_v59 = vmul.f32 %v1299_v58, %v1297_v50 }
 0x23c   : > { %640 = vst.msk [vmem:[%s1773_s15] sm:$0xff] %vm620_vm3, %v639_v59 }
 0x272   : > { %v681_v60 = vpop.f32.mrf.mxu0 }
 0x273   : > { %v687_v61 = vsel %vm620_vm3, %v681_v60, -inf }
 0x274   : > { %v688_v62 = vrot.slane %v687_v61, 4  ;;  %v1178_v63 = vpop.f32.mrf.mxu0 }
 0x276   : > { %v689_v0 = vmax.f32 %v687_v61, %v688_v62  ;;  %v684_v1 = vpop.f32.mrf.mxu0  ;;  %v747_v2 = vpop.f32.mrf.mxu1 }
 0x277   : > { %v753_v3 = vsel %vm620_vm3, %v747_v2, -inf  ;;  %v840_v1 = vld [vmem:[%s1773_s15] sm:$0xff] }
 0x278   : > { %v690_v4 = vrot.slane %v689_v0, 2  ;;  %v754_v5 = vrot.slane %v753_v3, 4  ;;  %v1179_v6 = vpop.f32.mrf.mxu0  ;;  %v1184_v7 = vpop.f32.mrf.mxu1 }
 0x27a   : > { %v691_v8 = vmax.f32 %v689_v0, %v690_v4  ;;  %v755_v9 = vmax.f32 %v753_v3, %v754_v5  ;;  %v750_v10 = vpop.f32.mrf.mxu1  ;;  %v813_v11 = vpop.f32.mrf.mxu0 }
 0x27b   : > { %v819_v12 = vsel %vm620_vm3, %v813_v11, -inf }
 0x27c   : > { %v692_v13 = vrot.slane %v691_v8, 1  ;;  %v756_v14 = vrot.slane %v755_v9, 2  ;;  %v820_v15 = vrot.slane %v819_v12, 4  ;;  %v1185_v16 = vpop.f32.mrf.mxu1  ;;  %v1190_v17 = vpop.f32.mrf.mxu0 }
 0x27e   : > { %v693_v18 = vmax.f32 %v691_v8, %v692_v13  ;;  %v757_v19 = vmax.f32 %v755_v9, %v756_v14  ;;  %v821_v20 = vmax.f32 %v819_v12, %v820_v15  ;;  %v816_v21 = vpop.f32.mrf.mxu0 }
 0x280   : > { %v694_v22 = vsub.f32 %v681_v60, %v693_v18  ;;  %v758_v23 = vrot.slane %v757_v19, 1  ;;  %v822_v24 = vrot.slane %v821_v20, 2  ;;  %v1191_v25 = vpop.f32.mrf.mxu0 }
 0x282   : > { %v695_v26 = vmul.f32 1.442695, %v694_v22  ;;  %v759_v27 = vmax.f32 %v757_v19, %v758_v23  ;;  %v823_v28 = vmax.f32 %v821_v20, %v822_v24 }
 0x284   : > { %1300 = vpow2.f32 %v695_v26  ;;  %v760_v29 = vsub.f32 %v747_v2, %v759_v27  ;;  %v824_v30 = vrot.slane %v823_v28, 1 }
 0x286   : > { %v761_v31 = vmul.f32 1.442695, %v760_v29  ;;  %v825_v32 = vmax.f32 %v823_v28, %v824_v30 }
 0x288   : > { %1302 = vpow2.f32 %v761_v31  ;;  %v826_v33 = vsub.f32 %v813_v11, %v825_v32 }
 0x28a   : > { %v827_v34 = vmul.f32 1.442695, %v826_v33 }
 0x28c   : > { %1304 = vpow2.f32 %v827_v34 }
 0x291   : > { %v1301_v35 = vpop.eup %1300 }
 0x292   : > { %v697_v36 = vsel %vm620_vm3, %v1301_v35, 0.0 }
 0x293   : > { %v698_v37 = vrot.slane %v697_v36, 4 }
 0x295   : > { %v1303_v38 = vpop.eup %1302  ;;  %v699_v39 = vadd.f32 %v698_v37, %v697_v36 }
 0x296   : > { %v763_v40 = vsel %vm620_vm3, %v1303_v38, 0.0 }
 0x297   : > { %v700_v41 = vrot.slane %v699_v39, 2  ;;  %v764_v42 = vrot.slane %v763_v40, 4 }
 0x299   : > { %v1305_v43 = vpop.eup %1304  ;;  %v701_v44 = vadd.f32 %v700_v41, %v699_v39  ;;  %v765_v45 = vadd.f32 %v764_v42, %v763_v40 }
 0x29a   : > { %v829_v46 = vsel %vm620_vm3, %v1305_v43, 0.0 }
 0x29b   : > { %v702_v47 = vrot.slane %v701_v44, 1  ;;  %v766_v48 = vrot.slane %v765_v45, 2  ;;  %v830_v49 = vrot.slane %v829_v46, 4 }
 0x29d   : > { %v703_v50 = vadd.f32 %v702_v47, %v701_v44  ;;  %v767_v51 = vadd.f32 %v766_v48, %v765_v45  ;;  %v831_v52 = vadd.f32 %v830_v49, %v829_v46 }
 0x29f   : > { %1306 = vrcp.f32 %v703_v50  ;;  %v768_v53 = vrot.slane %v767_v51, 1  ;;  %v832_v54 = vrot.slane %v831_v52, 2 }
 0x2a1   : > { %v769_v55 = vadd.f32 %v768_v53, %v767_v51  ;;  %v833_v56 = vadd.f32 %v832_v54, %v831_v52 }
 0x2a3   : > { %1308 = vrcp.f32 %v769_v55  ;;  %v834_v57 = vrot.slane %v833_v56, 1 }
 0x2a5   : > { %v835_v58 = vadd.f32 %v834_v57, %v833_v56 }
 0x2a7   : > { %1310 = vrcp.f32 %v835_v58 }
 0x2ac   : > { %v1307_v59 = vpop.eup %1306 }
 0x2ad   : > { %v705_v60 = vmul.f32 %v1307_v59, %v1301_v35 }
 0x2af   : > { %1107 = vst.msk [vmem:[%s1773_s15 + $0x8] sm:$0xff] %vm620_vm3, %v705_v60 }
 0x2b0   : > { %v1309_v61 = vpop.eup %1308 }
 0x2b1   : > { %v771_v62 = vmul.f32 %v1309_v61, %v1303_v38 }
 0x2b3   : > { %1109 = vst.msk [vmem:[%s1773_s15 + $0x10] sm:$0xff] %vm620_vm3, %v771_v62 }
 0x2b4   : > { %v1311_v63 = vpop.eup %1310 }
 0x2b5   : > { %v837_v0 = vmul.f32 %v1311_v63, %v1305_v43 }
 0x2b6   : > { %v841_v2 = vld [vmem:[%s1773_s15 + $0x8] sm:$0xff] }
 0x2b7   : > { %1111 = vst.msk [vmem:[%s1773_s15 + $0x18] sm:$0xff] %vm620_vm3, %v837_v0  ;;  %v844_v3 = vpack.c.bf16 %v841_v2, %v840_v1 }
 0x2b9   : > { %1194 = vmatprep.mubr.msk.bf16.mxu1 %vm620_vm3, %v844_v3 }
 0x2ba   : > { %v842_v4 = vld [vmem:[%s1773_s15 + $0x10] sm:$0xff] }
 0x2be   : > { %v843_v5 = vld [vmem:[%s1773_s15 + $0x18] sm:$0xff] }
 0x2bf   : > { %v845_v6 = vpack.c.bf16 %v843_v5, %v842_v4 }
 0x2c1   : > { %1195 = vmatmul.mubr.msk.bf16.vlgmr.msra.gmra.mxu1 %vm620_vm3, %v845_v6 }
 0x2c2   : > { %1431 = shalt.err (!%p1428_p9)
}
 0x2c3   : > { %s1432_s21 = scalar_lea.hbm %s1802_s5, 512  ;;  %s1436_s15 = scalar_lea.hbm %s1896_s7, 1024 }
 0x2c4   : > { %p1433_p13 = scmp.ne.s32.totalorder %s1802_s5, %s1432_s21  ;;  %p1437_p10 = scmp.lt.s32.totalorder %s1802_s5, %s1896_s7 }
 0x2c5   : > { %p1438_p11 = scmp.lt.s32.totalorder %s1436_s15, %s1432_s21 }
 0x2c6   : > { %p1434_p1 = pnand %p1433_p13, %p1921_p6 }
 0x2c7   : > { %p1439_p2 = por %p1438_p11, %p1437_p10 }
 0x2c8   : > { %p1435_p8 = pneg %p1434_p1 }
 0x2ca   : > { %p1440_p4 = pnand %p1439_p2, %p1435_p8 }
 0x2cc   : > { %1443 = shalt.err (!%p1440_p4)
}
 0x2cd   : > { %s1534_s13 = smov 128   ;;  %s1535_s14 = smov 8  }
 0x2ce   : > { %1213 = dma.vmem_to_hbm [thread:$0]  (%p1921_p6), %s1804_s16, 512, %s1802_s5, %s910_s11, %s1534_s13, %s1534_s13, %s1535_s14  }
 0x2cf   : > { %s375_s17 = scalar_lea.vmem [#allocation11], %s1091_s20  ;;  %s1844_s11 = scalar_lea.hbm %s1897_s8, %s1122_s26 }
 0x2d0   : > { %s944_s19 = sshll.u32 %s375_s17, 4  ;;  %s915_s20 = scalar_lea.sflag [#allocation12], %s1708_s1  ;;  %s1836_s19 = int_to_ptr.vmem [resolvable:$true] %s944_s19 }
 0x2d1   : > { %s1444_s21 = scalar_lea.vmem %s1836_s19, 512  ;;  %s1536_s22 = smov [#allocation11]  }
 0x2d2   : > { %p1445_p12 = scmp.ne.s32.totalorder %s1836_s19, %s1444_s21  ;;  %s1448_s23 = sshll.u32 %s1536_s22, 4  ;;  %s1449_s23 = int_to_ptr.vmem [resolvable:$false] %s1448_s23 }
 0x2d3   : > { %s1450_s15 = scalar_lea.vmem %s1449_s23, 1024  ;;  %p1451_p3 = scmp.lt.s32.totalorder %s1836_s19, %s1449_s23 }
 0x2d4   : > { %p1446_p0 = pnand %p1445_p12, %p1921_p6  ;;  %p1452_p7 = scmp.lt.s32.totalorder %s1450_s15, %s1444_s21 }
 0x2d6   : > { %p1447_p5 = pneg %p1446_p0  ;;  %p1453_p9 = por %p1452_p7, %p1451_p3 }
 0x2d8   : > { %p1454_p13 = pnand %p1453_p9, %p1447_p5 }
 0x381   : > { %v1196_v7 = vpop.f32.mrf.mxu1 }
 0x382   : > { %907 = vst.msk [vmem:[%s375_s17 + $0x10] sm:$0xff] %vm401_vm1, %v1196_v7 }
 0x383   : > { %v890_v8 = vpop.f32.mrf.mxu1 }
 0x384   : > { %905 = vst.msk [vmem:[%s375_s17] sm:$0xff] %vm401_vm1, %v890_v8 }
 0x385   : > { %v1197_v9 = vpop.f32.mrf.mxu1 }
 0x386   : > { %908 = vst.msk [vmem:[%s375_s17 + $0x18] sm:$0xff] %vm401_vm1, %v1197_v9 }
 0x387   : > { %v893_v10 = vpop.f32.mrf.mxu1 }
 0x388   : > { %906 = vst.msk [vmem:[%s375_s17 + $0x8] sm:$0xff] %vm401_vm1, %v893_v10 }
 0x389   : > { %1457 = shalt.err (!%p1454_p13)
}
 0x38a   : > { %s1458_s9 = scalar_lea.hbm %s1844_s11, 512  ;;  %s1462_s10 = scalar_lea.hbm %s1897_s8, 1024 }
 0x38b   : > { %p1459_p1 = scmp.ne.s32.totalorder %s1844_s11, %s1458_s9  ;;  %p1463_p11 = scmp.lt.s32.totalorder %s1844_s11, %s1897_s8 }
 0x38c   : > { %p1464_p2 = scmp.lt.s32.totalorder %s1462_s10, %s1458_s9 }
 0x38d   : > { %p1460_p8 = pnand %p1459_p1, %p1921_p6 }
 0x38e   : > { %p1465_p4 = por %p1464_p2, %p1463_p11 }
 0x38f   : > { %p1461_p10 = pneg %p1460_p8 }
 0x391   : > { %p1466_p12 = pnand %p1465_p4, %p1461_p10 }
 0x393   : > { %1469 = shalt.err (!%p1466_p12)
}
 0x394   : > { %1214 = dma.vmem_to_hbm [thread:$0]  (%p1921_p6), %s1836_s19, 512, %s1844_s11, %s915_s20, %s1534_s13, %s1534_s13, %s1535_s14  }
 0x395 PF: > { %s959_s16 = sand.u32 1, %s1508_s27   ;;  %p1922_p0 = scmp.ne.s32.totalorder %s1906_s12, 0 }
 0x396   : > { %p1923_p5 = scmp.ge.s32.totalorder %s1520_s30, 2  ;;  %s960_s5 = scalar_lea.sflag [#allocation4], %s959_s16 }
 0x398   : > { %p1232_p3 = pnand %p1923_p5, %p1922_p0 }
 0x39a   : > { %p1233_p7 = pneg %p1232_p3 }
 0x39c   : > { %1499 = dma.done.wait (%p1233_p7), %s960_s5, 512  }
 0x39d   : > { %1501 = vsyncadd (%p1233_p7), %s960_s5, 4294966784  ;;  %s969_s21 = scalar_lea.sflag [#allocation12], %s959_s16 }
 0x39e   : > { %1503 = dma.done.wait (%p1233_p7), %s969_s21, 512  }
 0x39f   : > { %1505 = vsyncadd (%p1233_p7), %s969_s21, 4294966784  ;;  %p27_p6 = scmp.ge.s32.totalorder %s1662_s18, 4   ;;  %s1924_s27 = smov %s1512_s28 }
 0x3a0   : > { %s1925_s28 = smov %s1516_s29  ;;  %s1926_s29 = smov %s1672_s24 }
 0x3a1   : > { %s1927_s30 = smov %s1662_s18  ;;  %29 = sbr.rel (!%p27_p6) target bundleno = 13 (0xd), region = 125 }
 0x3a6   :  { %974 = vsyncpa [#allocation3], 1 }
 0x3a7   :  { %976 = vsyncpa [#allocation3 + $0x1], 1 }
 0x3a8   :  { %977 = vsyncpa [#allocation6], 1 }
 0x3a9   :  { %978 = vsyncpa [#allocation9], 1 }
 0x3aa   :  { %979 = vsyncpa [#allocation4], 1 }
 0x3ab   :  { %981 = vsyncpa [#allocation4 + $0x1], 1 }
 0x3ac   :  { %982 = vsyncpa [#allocation12], 1 }
 0x3ad   :  { %984 = vsyncpa [#allocation12 + $0x1], 1 }

</bundles_post_ra>
